<compile_context>
chip_gen: v7x
topology: tpu7x:2x2x1
jax: 0.10.0
libtpu: 0.0.40
codegen_flags: <defaults>
</compile_context>

<pallas_src>
import numpy as np
import jax
import jax.numpy as jnp
from jax import lax
from jax.experimental import pallas as pl
from jax.experimental.pallas import tpu as pltpu


def _pack_weights(w1, b1, w2, b2, N, C):
    """Pack both convs' weights + biases into one (N*C, 2*C*9+2) f32 table.

    Row r = n*C + c (same row layout as the flattened input).  Columns:
      k*(C*9) + ci*9 + t  ->  w_k[c, ci, t]   (t = kh*3 + kw, replicated over n)
      2*(C*9) + k         ->  b_k[c]          (replicated over n)
    """
    NC = N * C
    c_of_row = np.tile(np.arange(C), N)                    # r = n*C + c  ->  c
    blocks = []
    for w in (w1, w2):
        wf = jnp.asarray(w, jnp.float32).reshape(C, C, 9)  # OIHW -> (co, ci, kh*3+kw)
        blk = wf[c_of_row].reshape(NC, C * 9)              # [r, ci*9+t] = w[c_r, ci, t]
        blocks.append(blk)
    biases = [jnp.asarray(b, jnp.float32)[c_of_row][:, None] for b in (b1, b2)]
    return jnp.concatenate(blocks + biases, axis=1)        # (NC, 2*C*9 + 2)


def _make_resblock_kernel(N, C, H, W):
    L = H * W
    NC = N * C
    NW = C * 9                  # weight columns per conv
    NCOL = 2 * NW + 2           # + one bias column per conv
    TAPS = [(dh, dw) for dh in (-1, 0, 1) for dw in (-1, 0, 1)]

    def kernel(x_ref, w_ref, o_ref):
        # x_ref: (NC, L) f32, rows image-major / channel-minor (r = n*C + c)
        # w_ref: (NC, NCOL) f32 weight/bias table (fits in a single vreg at NCOL<=128)
        x = x_ref[...]
        wtab = w_ref[...]

        # Edge-validity masks, built once and shared by both convs and all channels.
        pos = lax.broadcasted_iota(jnp.int32, (NC, L), 1)   # flat index p = h*W + w
        if W & (W - 1) == 0:
            wpos = jnp.bitwise_and(pos, W - 1)
        else:
            wpos = pos % W  # TODO(synk): non power-of-two W relies on vector rem lowering
        ok_l = wpos != 0             # valid for dw = -1 taps
        ok_r = wpos != (W - 1)       # valid for dw = +1 taps
        ok_t = pos >= W              # valid for dh = -1 taps (h != 0)
        ok_b = pos < (L - W)         # valid for dh = +1 taps (h != H-1)

        def tap_mask(dh, dw):
            m = None
            if dh == -1:
                m = ok_t
            elif dh == 1:
                m = ok_b
            if dw == -1:
                m = ok_l if m is None else jnp.logical_and(m, ok_l)
            elif dw == 1:
                m = ok_r if m is None else jnp.logical_and(m, ok_r)
            return m

        masks = [tap_mask(dh, dw) for (dh, dw) in TAPS]

        def conv3x3(src, k):
            """3x3 same-padding conv of src (NC, L) with weight set k, bias included."""
            partials = []
            for ci in range(C):
                # Broadcast input channel ci of each image to all C rows of that image.
                rows = [jnp.broadcast_to(src[n * C + ci:n * C + ci + 1, :], (C, L))
                        for n in range(N)]
                bcast = rows[0] if N == 1 else jnp.concatenate(rows, axis=0)  # (NC, L)
                acc = None
                for t, (dh, dw) in enumerate(TAPS):
                    d = dh * W + dw
                    plane = bcast if d == 0 else pltpu.roll(bcast, (-d) % L, axis=1)
                    m = masks[t]
                    if m is not None:
                        plane = jnp.where(m, plane, 0.0)
                    c0 = k * NW + ci * 9 + t
                    wcol = wtab[:, c0:c0 + 1]               # (NC, 1) weight column
                    term = wcol * plane                     # full-vreg FMA term
                    acc = term if acc is None else acc + term
                partials.append(acc)
            out = wtab[:, 2 * NW + k:2 * NW + k + 1]        # bias column (NC, 1)
            for p in partials:
                out = out + p                               # first add broadcasts bias
            return out

        mid = jnp.maximum(conv3x3(x, 0), 0.0) + x           # relu(conv1(x) + b1) + x
        out = jnp.maximum(conv3x3(mid, 1), 0.0)             # relu(conv2(mid) + b2)
        o_ref[...] = out.astype(o_ref.dtype)

    return kernel, NCOL


def resblock_pallas(x_nchw, w1, b1, w2, b2):
    N, C, H, W = x_nchw.shape
    L = H * W
    NC = N * C
    x2d = x_nchw.astype(jnp.float32).reshape(NC, L)         # free (bitcast) reshape
    wpack = _pack_weights(w1, b1, w2, b2, N, C)
    kernel, NCOL = _make_resblock_kernel(N, C, H, W)

    out2d = pl.pallas_call(
        kernel,
        out_shape=jax.ShapeDtypeStruct((NC, L), jnp.float32),
        grid_spec=pltpu.PrefetchScalarGridSpec(
            num_scalar_prefetch=0,
            grid=(1,),                                      # whole problem in one step
            in_specs=[pl.BlockSpec((NC, L), lambda i: (0, 0)),
                      pl.BlockSpec((NC, NCOL), lambda i: (0, 0))],
            out_specs=pl.BlockSpec((NC, L), lambda i: (0, 0)),
        ),
        compiler_params=pltpu.CompilerParams(dimension_semantics=("arbitrary",)),
    )(x2d, wpack)

    return out2d.reshape(N, C, H, W)                        # free (bitcast) reshape


def resblock_ref(x_nchw, w1, b1, w2, b2):
    """Pure-JAX reference matching the PyTorch forward pass (NCHW)."""
    dn = lax.conv_dimension_numbers(x_nchw.shape, w1.shape, ("NCHW", "OIHW", "NCHW"))
    y = lax.conv_general_dilated(x_nchw, w1, (1, 1), ((1, 1), (1, 1)),
                                 dimension_numbers=dn)
    y = jax.nn.relu(y + b1.reshape(1, -1, 1, 1)) + x_nchw
    y2 = lax.conv_general_dilated(y, w2, (1, 1), ((1, 1), (1, 1)),
                                  dimension_numbers=dn)
    return jax.nn.relu(y2 + b2.reshape(1, -1, 1, 1))


if __name__ == "__main__":
    key = jax.random.PRNGKey(0)
    kx, k1, kb1, k2, kb2 = jax.random.split(key, 5)

    N, C, H, W = 2, 4, 16, 16          # n_feats=4, kernel_size=3
    x = jax.random.normal(kx, (N, C, H, W), jnp.float32)

    fan_in = C * 3 * 3
    w1 = jax.random.normal(k1, (C, C, 3, 3), jnp.float32) / jnp.sqrt(fan_in)
    b1 = 0.1 * jax.random.normal(kb1, (C,), jnp.float32)
    w2 = jax.random.normal(k2, (C, C, 3, 3), jnp.float32) / jnp.sqrt(fan_in)
    b2 = 0.1 * jax.random.normal(kb2, (C,), jnp.float32)

    out = jax.jit(resblock_pallas)(x, w1, b1, w2, b2)
    jax.block_until_ready(out)

    ref = resblock_ref(x, w1, b1, w2, b2)
    assert out.shape == (N, C, H, W)
    err = float(jnp.max(jnp.abs(out - ref)))
    assert jnp.allclose(out, ref, rtol=1e-4, atol=1e-4), err

    print("KERNEL_OK")
</pallas_src>

<mosaic_0001>
module attributes {stable_mosaic.version = 11 : i64} {
  func.func @kernel(%arg0: i32, %arg1: memref<8x256xf32, #tpu.memory_space<vmem>>, %arg2: memref<8x74xf32, #tpu.memory_space<vmem>>, %arg3: memref<8x256xf32, #tpu.memory_space<vmem>>) attributes {dimension_semantics = [#tpu.dimension_semantics<arbitrary>], iteration_bounds = array<i64: 1>, scalar_prefetch = 0 : i64, scratch_operands = 0 : i64, tpu.core_type = #tpu.core_type<tc>, window_params = [{pipeline_mode = #tpu.pipeline_mode<synchronous>, transform_indices = @transform_0, window_bounds = array<i64: 8, 256>}, {pipeline_mode = #tpu.pipeline_mode<synchronous>, transform_indices = @transform_1, window_bounds = array<i64: 8, 74>}, {pipeline_mode = #tpu.pipeline_mode<synchronous>, transform_indices = @transform_2, window_bounds = array<i64: 8, 256>}]} {
    %c0 = arith.constant 0 : index
    %c0_0 = arith.constant 0 : index
    %0 = vector.load %arg1[%c0, %c0_0] : memref<8x256xf32, #tpu.memory_space<vmem>>, vector<8x256xf32>
    %c0_1 = arith.constant 0 : index
    %c0_2 = arith.constant 0 : index
    %1 = vector.load %arg2[%c0_1, %c0_2] : memref<8x74xf32, #tpu.memory_space<vmem>>, vector<8x74xf32>
    %2 = tpu.iota {dimensions = array<i32: 1>} : vector<8x256xi32>
    %c15_i32 = arith.constant 15 : i32
    %3 = vector.broadcast %c15_i32 : i32 to vector<8x256xi32>
    %4 = arith.andi %2, %3 : vector<8x256xi32>
    %c0_i32 = arith.constant 0 : i32
    %5 = vector.broadcast %c0_i32 : i32 to vector<8x256xi32>
    %6 = arith.cmpi ne, %4, %5 : vector<8x256xi32>
    %c15_i32_3 = arith.constant 15 : i32
    %7 = vector.broadcast %c15_i32_3 : i32 to vector<8x256xi32>
    %8 = arith.cmpi ne, %4, %7 : vector<8x256xi32>
    %c16_i32 = arith.constant 16 : i32
    %9 = vector.broadcast %c16_i32 : i32 to vector<8x256xi32>
    %10 = arith.cmpi sge, %2, %9 : vector<8x256xi32>
    %c240_i32 = arith.constant 240 : i32
    %11 = vector.broadcast %c240_i32 : i32 to vector<8x256xi32>
    %12 = arith.cmpi slt, %2, %11 : vector<8x256xi32>
    %13 = arith.andi %10, %6 : vector<8x256xi1>
    %14 = arith.andi %10, %8 : vector<8x256xi1>
    %15 = arith.andi %12, %6 : vector<8x256xi1>
    %16 = arith.andi %12, %8 : vector<8x256xi1>
    %17 = vector.extract_strided_slice %0 {offsets = [0, 0], sizes = [1, 256], strides = [1, 1]} : vector<8x256xf32> to vector<1x256xf32>
    %18 = vector.shape_cast %17 : vector<1x256xf32> to vector<1x256xf32>
    %19 = vector.broadcast %18 : vector<1x256xf32> to vector<4x256xf32>
    %20 = vector.extract_strided_slice %0 {offsets = [4, 0], sizes = [1, 256], strides = [1, 1]} : vector<8x256xf32> to vector<1x256xf32>
    %21 = vector.shape_cast %20 : vector<1x256xf32> to vector<1x256xf32>
    %22 = vector.broadcast %21 : vector<1x256xf32> to vector<4x256xf32>
    %23 = tpu.concatenate %19, %22 in 0 : vector<4x256xf32>, vector<4x256xf32> -> vector<8x256xf32>
    %c17_i32 = arith.constant 17 : i32
    %24 = tpu.dynamic_rotate %23 by %c17_i32 dim 1 : vector<8x256xf32>, i32 -> vector<8x256xf32>
    %cst = arith.constant 0.000000e+00 : f32
    %25 = vector.broadcast %cst : f32 to vector<8x256xf32>
    %26 = arith.select %13, %24, %25 : vector<8x256xi1>, vector<8x256xf32>
    %27 = vector.extract_strided_slice %1 {offsets = [0, 0], sizes = [8, 1], strides = [1, 1]} : vector<8x74xf32> to vector<8x1xf32>
    %28 = vector.broadcast %27 : vector<8x1xf32> to vector<8x256xf32>
    %29 = arith.mulf %28, %26 : vector<8x256xf32>
    %c16_i32_4 = arith.constant 16 : i32
    %30 = tpu.dynamic_rotate %23 by %c16_i32_4 dim 1 : vector<8x256xf32>, i32 -> vector<8x256xf32>
    %cst_5 = arith.constant 0.000000e+00 : f32
    %31 = vector.broadcast %cst_5 : f32 to vector<8x256xf32>
    %32 = arith.select %10, %30, %31 : vector<8x256xi1>, vector<8x256xf32>
    %33 = vector.extract_strided_slice %1 {offsets = [0, 1], sizes = [8, 1], strides = [1, 1]} : vector<8x74xf32> to vector<8x1xf32>
    %34 = vector.broadcast %33 : vector<8x1xf32> to vector<8x256xf32>
    %35 = arith.mulf %34, %32 : vector<8x256xf32>
    %36 = arith.addf %29, %35 : vector<8x256xf32>
    %c15_i32_6 = arith.constant 15 : i32
    %37 = tpu.dynamic_rotate %23 by %c15_i32_6 dim 1 : vector<8x256xf32>, i32 -> vector<8x256xf32>
    %cst_7 = arith.constant 0.000000e+00 : f32
    %38 = vector.broadcast %cst_7 : f32 to vector<8x256xf32>
    %39 = arith.select %14, %37, %38 : vector<8x256xi1>, vector<8x256xf32>
    %40 = vector.extract_strided_slice %1 {offsets = [0, 2], sizes = [8, 1], strides = [1, 1]} : vector<8x74xf32> to vector<8x1xf32>
    %41 = vector.broadcast %40 : vector<8x1xf32> to vector<8x256xf32>
    %42 = arith.mulf %41, %39 : vector<8x256xf32>
    %43 = arith.addf %36, %42 : vector<8x256xf32>
    %c1_i32 = arith.constant 1 : i32
    %44 = tpu.dynamic_rotate %23 by %c1_i32 dim 1 : vector<8x256xf32>, i32 -> vector<8x256xf32>
    %cst_8 = arith.constant 0.000000e+00 : f32
    %45 = vector.broadcast %cst_8 : f32 to vector<8x256xf32>
    %46 = arith.select %6, %44, %45 : vector<8x256xi1>, vector<8x256xf32>
    %47 = vector.extract_strided_slice %1 {offsets = [0, 3], sizes = [8, 1], strides = [1, 1]} : vector<8x74xf32> to vector<8x1xf32>
    %48 = vector.broadcast %47 : vector<8x1xf32> to vector<8x256xf32>
    %49 = arith.mulf %48, %46 : vector<8x256xf32>
    %50 = arith.addf %43, %49 : vector<8x256xf32>
    %51 = vector.extract_strided_slice %1 {offsets = [0, 4], sizes = [8, 1], strides = [1, 1]} : vector<8x74xf32> to vector<8x1xf32>
    %52 = vector.broadcast %51 : vector<8x1xf32> to vector<8x256xf32>
    %53 = arith.mulf %52, %23 : vector<8x256xf32>
    %54 = arith.addf %50, %53 : vector<8x256xf32>
    %c255_i32 = arith.constant 255 : i32
    %55 = tpu.dynamic_rotate %23 by %c255_i32 dim 1 : vector<8x256xf32>, i32 -> vector<8x256xf32>
    %cst_9 = arith.constant 0.000000e+00 : f32
    %56 = vector.broadcast %cst_9 : f32 to vector<8x256xf32>
    %57 = arith.select %8, %55, %56 : vector<8x256xi1>, vector<8x256xf32>
    %58 = vector.extract_strided_slice %1 {offsets = [0, 5], sizes = [8, 1], strides = [1, 1]} : vector<8x74xf32> to vector<8x1xf32>
    %59 = vector.broadcast %58 : vector<8x1xf32> to vector<8x256xf32>
    %60 = arith.mulf %59, %57 : vector<8x256xf32>
    %61 = arith.addf %54, %60 : vector<8x256xf32>
    %c241_i32 = arith.constant 241 : i32
    %62 = tpu.dynamic_rotate %23 by %c241_i32 dim 1 : vector<8x256xf32>, i32 -> vector<8x256xf32>
    %cst_10 = arith.constant 0.000000e+00 : f32
    %63 = vector.broadcast %cst_10 : f32 to vector<8x256xf32>
    %64 = arith.select %15, %62, %63 : vector<8x256xi1>, vector<8x256xf32>
    %65 = vector.extract_strided_slice %1 {offsets = [0, 6], sizes = [8, 1], strides = [1, 1]} : vector<8x74xf32> to vector<8x1xf32>
    %66 = vector.broadcast %65 : vector<8x1xf32> to vector<8x256xf32>
    %67 = arith.mulf %66, %64 : vector<8x256xf32>
    %68 = arith.addf %61, %67 : vector<8x256xf32>
    %c240_i32_11 = arith.constant 240 : i32
    %69 = tpu.dynamic_rotate %23 by %c240_i32_11 dim 1 : vector<8x256xf32>, i32 -> vector<8x256xf32>
    %cst_12 = arith.constant 0.000000e+00 : f32
    %70 = vector.broadcast %cst_12 : f32 to vector<8x256xf32>
    %71 = arith.select %12, %69, %70 : vector<8x256xi1>, vector<8x256xf32>
    %72 = vector.extract_strided_slice %1 {offsets = [0, 7], sizes = [8, 1], strides = [1, 1]} : vector<8x74xf32> to vector<8x1xf32>
    %73 = vector.broadcast %72 : vector<8x1xf32> to vector<8x256xf32>
    %74 = arith.mulf %73, %71 : vector<8x256xf32>
    %75 = arith.addf %68, %74 : vector<8x256xf32>
    %c239_i32 = arith.constant 239 : i32
    %76 = tpu.dynamic_rotate %23 by %c239_i32 dim 1 : vector<8x256xf32>, i32 -> vector<8x256xf32>
    %cst_13 = arith.constant 0.000000e+00 : f32
    %77 = vector.broadcast %cst_13 : f32 to vector<8x256xf32>
    %78 = arith.select %16, %76, %77 : vector<8x256xi1>, vector<8x256xf32>
    %79 = vector.extract_strided_slice %1 {offsets = [0, 8], sizes = [8, 1], strides = [1, 1]} : vector<8x74xf32> to vector<8x1xf32>
    %80 = vector.broadcast %79 : vector<8x1xf32> to vector<8x256xf32>
    %81 = arith.mulf %80, %78 : vector<8x256xf32>
    %82 = arith.addf %75, %81 : vector<8x256xf32>
    %83 = vector.extract_strided_slice %0 {offsets = [1, 0], sizes = [1, 256], strides = [1, 1]} : vector<8x256xf32> to vector<1x256xf32>
    %84 = vector.shape_cast %83 : vector<1x256xf32> to vector<1x256xf32>
    %85 = vector.broadcast %84 : vector<1x256xf32> to vector<4x256xf32>
    %86 = vector.extract_strided_slice %0 {offsets = [5, 0], sizes = [1, 256], strides = [1, 1]} : vector<8x256xf32> to vector<1x256xf32>
    %87 = vector.shape_cast %86 : vector<1x256xf32> to vector<1x256xf32>
    %88 = vector.broadcast %87 : vector<1x256xf32> to vector<4x256xf32>
    %89 = tpu.concatenate %85, %88 in 0 : vector<4x256xf32>, vector<4x256xf32> -> vector<8x256xf32>
    %c17_i32_14 = arith.constant 17 : i32
    %90 = tpu.dynamic_rotate %89 by %c17_i32_14 dim 1 : vector<8x256xf32>, i32 -> vector<8x256xf32>
    %cst_15 = arith.constant 0.000000e+00 : f32
    %91 = vector.broadcast %cst_15 : f32 to vector<8x256xf32>
    %92 = arith.select %13, %90, %91 : vector<8x256xi1>, vector<8x256xf32>
    %93 = vector.extract_strided_slice %1 {offsets = [0, 9], sizes = [8, 1], strides = [1, 1]} : vector<8x74xf32> to vector<8x1xf32>
    %94 = vector.broadcast %93 : vector<8x1xf32> to vector<8x256xf32>
    %95 = arith.mulf %94, %92 : vector<8x256xf32>
    %c16_i32_16 = arith.constant 16 : i32
    %96 = tpu.dynamic_rotate %89 by %c16_i32_16 dim 1 : vector<8x256xf32>, i32 -> vector<8x256xf32>
    %cst_17 = arith.constant 0.000000e+00 : f32
    %97 = vector.broadcast %cst_17 : f32 to vector<8x256xf32>
    %98 = arith.select %10, %96, %97 : vector<8x256xi1>, vector<8x256xf32>
    %99 = vector.extract_strided_slice %1 {offsets = [0, 10], sizes = [8, 1], strides = [1, 1]} : vector<8x74xf32> to vector<8x1xf32>
    %100 = vector.broadcast %99 : vector<8x1xf32> to vector<8x256xf32>
    %101 = arith.mulf %100, %98 : vector<8x256xf32>
    %102 = arith.addf %95, %101 : vector<8x256xf32>
    %c15_i32_18 = arith.constant 15 : i32
    %103 = tpu.dynamic_rotate %89 by %c15_i32_18 dim 1 : vector<8x256xf32>, i32 -> vector<8x256xf32>
    %cst_19 = arith.constant 0.000000e+00 : f32
    %104 = vector.broadcast %cst_19 : f32 to vector<8x256xf32>
    %105 = arith.select %14, %103, %104 : vector<8x256xi1>, vector<8x256xf32>
    %106 = vector.extract_strided_slice %1 {offsets = [0, 11], sizes = [8, 1], strides = [1, 1]} : vector<8x74xf32> to vector<8x1xf32>
    %107 = vector.broadcast %106 : vector<8x1xf32> to vector<8x256xf32>
    %108 = arith.mulf %107, %105 : vector<8x256xf32>
    %109 = arith.addf %102, %108 : vector<8x256xf32>
    %c1_i32_20 = arith.constant 1 : i32
    %110 = tpu.dynamic_rotate %89 by %c1_i32_20 dim 1 : vector<8x256xf32>, i32 -> vector<8x256xf32>
    %cst_21 = arith.constant 0.000000e+00 : f32
    %111 = vector.broadcast %cst_21 : f32 to vector<8x256xf32>
    %112 = arith.select %6, %110, %111 : vector<8x256xi1>, vector<8x256xf32>
    %113 = vector.extract_strided_slice %1 {offsets = [0, 12], sizes = [8, 1], strides = [1, 1]} : vector<8x74xf32> to vector<8x1xf32>
    %114 = vector.broadcast %113 : vector<8x1xf32> to vector<8x256xf32>
    %115 = arith.mulf %114, %112 : vector<8x256xf32>
    %116 = arith.addf %109, %115 : vector<8x256xf32>
    %117 = vector.extract_strided_slice %1 {offsets = [0, 13], sizes = [8, 1], strides = [1, 1]} : vector<8x74xf32> to vector<8x1xf32>
    %118 = vector.broadcast %117 : vector<8x1xf32> to vector<8x256xf32>
    %119 = arith.mulf %118, %89 : vector<8x256xf32>
    %120 = arith.addf %116, %119 : vector<8x256xf32>
    %c255_i32_22 = arith.constant 255 : i32
    %121 = tpu.dynamic_rotate %89 by %c255_i32_22 dim 1 : vector<8x256xf32>, i32 -> vector<8x256xf32>
    %cst_23 = arith.constant 0.000000e+00 : f32
    %122 = vector.broadcast %cst_23 : f32 to vector<8x256xf32>
    %123 = arith.select %8, %121, %122 : vector<8x256xi1>, vector<8x256xf32>
    %124 = vector.extract_strided_slice %1 {offsets = [0, 14], sizes = [8, 1], strides = [1, 1]} : vector<8x74xf32> to vector<8x1xf32>
    %125 = vector.broadcast %124 : vector<8x1xf32> to vector<8x256xf32>
    %126 = arith.mulf %125, %123 : vector<8x256xf32>
    %127 = arith.addf %120, %126 : vector<8x256xf32>
    %c241_i32_24 = arith.constant 241 : i32
    %128 = tpu.dynamic_rotate %89 by %c241_i32_24 dim 1 : vector<8x256xf32>, i32 -> vector<8x256xf32>
    %cst_25 = arith.constant 0.000000e+00 : f32
    %129 = vector.broadcast %cst_25 : f32 to vector<8x256xf32>
    %130 = arith.select %15, %128, %129 : vector<8x256xi1>, vector<8x256xf32>
    %131 = vector.extract_strided_slice %1 {offsets = [0, 15], sizes = [8, 1], strides = [1, 1]} : vector<8x74xf32> to vector<8x1xf32>
    %132 = vector.broadcast %131 : vector<8x1xf32> to vector<8x256xf32>
    %133 = arith.mulf %132, %130 : vector<8x256xf32>
    %134 = arith.addf %127, %133 : vector<8x256xf32>
    %c240_i32_26 = arith.constant 240 : i32
    %135 = tpu.dynamic_rotate %89 by %c240_i32_26 dim 1 : vector<8x256xf32>, i32 -> vector<8x256xf32>
    %cst_27 = arith.constant 0.000000e+00 : f32
    %136 = vector.broadcast %cst_27 : f32 to vector<8x256xf32>
    %137 = arith.select %12, %135, %136 : vector<8x256xi1>, vector<8x256xf32>
    %138 = vector.extract_strided_slice %1 {offsets = [0, 16], sizes = [8, 1], strides = [1, 1]} : vector<8x74xf32> to vector<8x1xf32>
    %139 = vector.broadcast %138 : vector<8x1xf32> to vector<8x256xf32>
    %140 = arith.mulf %139, %137 : vector<8x256xf32>
    %141 = arith.addf %134, %140 : vector<8x256xf32>
    %c239_i32_28 = arith.constant 239 : i32
    %142 = tpu.dynamic_rotate %89 by %c239_i32_28 dim 1 : vector<8x256xf32>, i32 -> vector<8x256xf32>
    %cst_29 = arith.constant 0.000000e+00 : f32
    %143 = vector.broadcast %cst_29 : f32 to vector<8x256xf32>
    %144 = arith.select %16, %142, %143 : vector<8x256xi1>, vector<8x256xf32>
    %145 = vector.extract_strided_slice %1 {offsets = [0, 17], sizes = [8, 1], strides = [1, 1]} : vector<8x74xf32> to vector<8x1xf32>
    %146 = vector.broadcast %145 : vector<8x1xf32> to vector<8x256xf32>
    %147 = arith.mulf %146, %144 : vector<8x256xf32>
    %148 = arith.addf %141, %147 : vector<8x256xf32>
    %149 = vector.extract_strided_slice %0 {offsets = [2, 0], sizes = [1, 256], strides = [1, 1]} : vector<8x256xf32> to vector<1x256xf32>
    %150 = vector.shape_cast %149 : vector<1x256xf32> to vector<1x256xf32>
    %151 = vector.broadcast %150 : vector<1x256xf32> to vector<4x256xf32>
    %152 = vector.extract_strided_slice %0 {offsets = [6, 0], sizes = [1, 256], strides = [1, 1]} : vector<8x256xf32> to vector<1x256xf32>
    %153 = vector.shape_cast %152 : vector<1x256xf32> to vector<1x256xf32>
    %154 = vector.broadcast %153 : vector<1x256xf32> to vector<4x256xf32>
    %155 = tpu.concatenate %151, %154 in 0 : vector<4x256xf32>, vector<4x256xf32> -> vector<8x256xf32>
    %c17_i32_30 = arith.constant 17 : i32
    %156 = tpu.dynamic_rotate %155 by %c17_i32_30 dim 1 : vector<8x256xf32>, i32 -> vector<8x256xf32>
    %cst_31 = arith.constant 0.000000e+00 : f32
    %157 = vector.broadcast %cst_31 : f32 to vector<8x256xf32>
    %158 = arith.select %13, %156, %157 : vector<8x256xi1>, vector<8x256xf32>
    %159 = vector.extract_strided_slice %1 {offsets = [0, 18], sizes = [8, 1], strides = [1, 1]} : vector<8x74xf32> to vector<8x1xf32>
    %160 = vector.broadcast %159 : vector<8x1xf32> to vector<8x256xf32>
    %161 = arith.mulf %160, %158 : vector<8x256xf32>
    %c16_i32_32 = arith.constant 16 : i32
    %162 = tpu.dynamic_rotate %155 by %c16_i32_32 dim 1 : vector<8x256xf32>, i32 -> vector<8x256xf32>
    %cst_33 = arith.constant 0.000000e+00 : f32
    %163 = vector.broadcast %cst_33 : f32 to vector<8x256xf32>
    %164 = arith.select %10, %162, %163 : vector<8x256xi1>, vector<8x256xf32>
    %165 = vector.extract_strided_slice %1 {offsets = [0, 19], sizes = [8, 1], strides = [1, 1]} : vector<8x74xf32> to vector<8x1xf32>
    %166 = vector.broadcast %165 : vector<8x1xf32> to vector<8x256xf32>
    %167 = arith.mulf %166, %164 : vector<8x256xf32>
    %168 = arith.addf %161, %167 : vector<8x256xf32>
    %c15_i32_34 = arith.constant 15 : i32
    %169 = tpu.dynamic_rotate %155 by %c15_i32_34 dim 1 : vector<8x256xf32>, i32 -> vector<8x256xf32>
    %cst_35 = arith.constant 0.000000e+00 : f32
    %170 = vector.broadcast %cst_35 : f32 to vector<8x256xf32>
    %171 = arith.select %14, %169, %170 : vector<8x256xi1>, vector<8x256xf32>
    %172 = vector.extract_strided_slice %1 {offsets = [0, 20], sizes = [8, 1], strides = [1, 1]} : vector<8x74xf32> to vector<8x1xf32>
    %173 = vector.broadcast %172 : vector<8x1xf32> to vector<8x256xf32>
    %174 = arith.mulf %173, %171 : vector<8x256xf32>
    %175 = arith.addf %168, %174 : vector<8x256xf32>
    %c1_i32_36 = arith.constant 1 : i32
    %176 = tpu.dynamic_rotate %155 by %c1_i32_36 dim 1 : vector<8x256xf32>, i32 -> vector<8x256xf32>
    %cst_37 = arith.constant 0.000000e+00 : f32
    %177 = vector.broadcast %cst_37 : f32 to vector<8x256xf32>
    %178 = arith.select %6, %176, %177 : vector<8x256xi1>, vector<8x256xf32>
    %179 = vector.extract_strided_slice %1 {offsets = [0, 21], sizes = [8, 1], strides = [1, 1]} : vector<8x74xf32> to vector<8x1xf32>
    %180 = vector.broadcast %179 : vector<8x1xf32> to vector<8x256xf32>
    %181 = arith.mulf %180, %178 : vector<8x256xf32>
    %182 = arith.addf %175, %181 : vector<8x256xf32>
    %183 = vector.extract_strided_slice %1 {offsets = [0, 22], sizes = [8, 1], strides = [1, 1]} : vector<8x74xf32> to vector<8x1xf32>
    %184 = vector.broadcast %183 : vector<8x1xf32> to vector<8x256xf32>
    %185 = arith.mulf %184, %155 : vector<8x256xf32>
    %186 = arith.addf %182, %185 : vector<8x256xf32>
    %c255_i32_38 = arith.constant 255 : i32
    %187 = tpu.dynamic_rotate %155 by %c255_i32_38 dim 1 : vector<8x256xf32>, i32 -> vector<8x256xf32>
    %cst_39 = arith.constant 0.000000e+00 : f32
    %188 = vector.broadcast %cst_39 : f32 to vector<8x256xf32>
    %189 = arith.select %8, %187, %188 : vector<8x256xi1>, vector<8x256xf32>
    %190 = vector.extract_strided_slice %1 {offsets = [0, 23], sizes = [8, 1], strides = [1, 1]} : vector<8x74xf32> to vector<8x1xf32>
    %191 = vector.broadcast %190 : vector<8x1xf32> to vector<8x256xf32>
    %192 = arith.mulf %191, %189 : vector<8x256xf32>
    %193 = arith.addf %186, %192 : vector<8x256xf32>
    %c241_i32_40 = arith.constant 241 : i32
    %194 = tpu.dynamic_rotate %155 by %c241_i32_40 dim 1 : vector<8x256xf32>, i32 -> vector<8x256xf32>
    %cst_41 = arith.constant 0.000000e+00 : f32
    %195 = vector.broadcast %cst_41 : f32 to vector<8x256xf32>
    %196 = arith.select %15, %194, %195 : vector<8x256xi1>, vector<8x256xf32>
    %197 = vector.extract_strided_slice %1 {offsets = [0, 24], sizes = [8, 1], strides = [1, 1]} : vector<8x74xf32> to vector<8x1xf32>
    %198 = vector.broadcast %197 : vector<8x1xf32> to vector<8x256xf32>
    %199 = arith.mulf %198, %196 : vector<8x256xf32>
    %200 = arith.addf %193, %199 : vector<8x256xf32>
    %c240_i32_42 = arith.constant 240 : i32
    %201 = tpu.dynamic_rotate %155 by %c240_i32_42 dim 1 : vector<8x256xf32>, i32 -> vector<8x256xf32>
    %cst_43 = arith.constant 0.000000e+00 : f32
    %202 = vector.broadcast %cst_43 : f32 to vector<8x256xf32>
    %203 = arith.select %12, %201, %202 : vector<8x256xi1>, vector<8x256xf32>
    %204 = vector.extract_strided_slice %1 {offsets = [0, 25], sizes = [8, 1], strides = [1, 1]} : vector<8x74xf32> to vector<8x1xf32>
    %205 = vector.broadcast %204 : vector<8x1xf32> to vector<8x256xf32>
    %206 = arith.mulf %205, %203 : vector<8x256xf32>
    %207 = arith.addf %200, %206 : vector<8x256xf32>
    %c239_i32_44 = arith.constant 239 : i32
    %208 = tpu.dynamic_rotate %155 by %c239_i32_44 dim 1 : vector<8x256xf32>, i32 -> vector<8x256xf32>
    %cst_45 = arith.constant 0.000000e+00 : f32
    %209 = vector.broadcast %cst_45 : f32 to vector<8x256xf32>
    %210 = arith.select %16, %208, %209 : vector<8x256xi1>, vector<8x256xf32>
    %211 = vector.extract_strided_slice %1 {offsets = [0, 26], sizes = [8, 1], strides = [1, 1]} : vector<8x74xf32> to vector<8x1xf32>
    %212 = vector.broadcast %211 : vector<8x1xf32> to vector<8x256xf32>
    %213 = arith.mulf %212, %210 : vector<8x256xf32>
    %214 = arith.addf %207, %213 : vector<8x256xf32>
    %215 = vector.extract_strided_slice %0 {offsets = [3, 0], sizes = [1, 256], strides = [1, 1]} : vector<8x256xf32> to vector<1x256xf32>
    %216 = vector.shape_cast %215 : vector<1x256xf32> to vector<1x256xf32>
    %217 = vector.broadcast %216 : vector<1x256xf32> to vector<4x256xf32>
    %218 = vector.extract_strided_slice %0 {offsets = [7, 0], sizes = [1, 256], strides = [1, 1]} : vector<8x256xf32> to vector<1x256xf32>
    %219 = vector.shape_cast %218 : vector<1x256xf32> to vector<1x256xf32>
    %220 = vector.broadcast %219 : vector<1x256xf32> to vector<4x256xf32>
    %221 = tpu.concatenate %217, %220 in 0 : vector<4x256xf32>, vector<4x256xf32> -> vector<8x256xf32>
    %c17_i32_46 = arith.constant 17 : i32
    %222 = tpu.dynamic_rotate %221 by %c17_i32_46 dim 1 : vector<8x256xf32>, i32 -> vector<8x256xf32>
    %cst_47 = arith.constant 0.000000e+00 : f32
    %223 = vector.broadcast %cst_47 : f32 to vector<8x256xf32>
    %224 = arith.select %13, %222, %223 : vector<8x256xi1>, vector<8x256xf32>
    %225 = vector.extract_strided_slice %1 {offsets = [0, 27], sizes = [8, 1], strides = [1, 1]} : vector<8x74xf32> to vector<8x1xf32>
    %226 = vector.broadcast %225 : vector<8x1xf32> to vector<8x256xf32>
    %227 = arith.mulf %226, %224 : vector<8x256xf32>
    %c16_i32_48 = arith.constant 16 : i32
    %228 = tpu.dynamic_rotate %221 by %c16_i32_48 dim 1 : vector<8x256xf32>, i32 -> vector<8x256xf32>
    %cst_49 = arith.constant 0.000000e+00 : f32
    %229 = vector.broadcast %cst_49 : f32 to vector<8x256xf32>
    %230 = arith.select %10, %228, %229 : vector<8x256xi1>, vector<8x256xf32>
    %231 = vector.extract_strided_slice %1 {offsets = [0, 28], sizes = [8, 1], strides = [1, 1]} : vector<8x74xf32> to vector<8x1xf32>
    %232 = vector.broadcast %231 : vector<8x1xf32> to vector<8x256xf32>
    %233 = arith.mulf %232, %230 : vector<8x256xf32>
    %234 = arith.addf %227, %233 : vector<8x256xf32>
    %c15_i32_50 = arith.constant 15 : i32
    %235 = tpu.dynamic_rotate %221 by %c15_i32_50 dim 1 : vector<8x256xf32>, i32 -> vector<8x256xf32>
    %cst_51 = arith.constant 0.000000e+00 : f32
    %236 = vector.broadcast %cst_51 : f32 to vector<8x256xf32>
    %237 = arith.select %14, %235, %236 : vector<8x256xi1>, vector<8x256xf32>
    %238 = vector.extract_strided_slice %1 {offsets = [0, 29], sizes = [8, 1], strides = [1, 1]} : vector<8x74xf32> to vector<8x1xf32>
    %239 = vector.broadcast %238 : vector<8x1xf32> to vector<8x256xf32>
    %240 = arith.mulf %239, %237 : vector<8x256xf32>
    %241 = arith.addf %234, %240 : vector<8x256xf32>
    %c1_i32_52 = arith.constant 1 : i32
    %242 = tpu.dynamic_rotate %221 by %c1_i32_52 dim 1 : vector<8x256xf32>, i32 -> vector<8x256xf32>
    %cst_53 = arith.constant 0.000000e+00 : f32
    %243 = vector.broadcast %cst_53 : f32 to vector<8x256xf32>
    %244 = arith.select %6, %242, %243 : vector<8x256xi1>, vector<8x256xf32>
    %245 = vector.extract_strided_slice %1 {offsets = [0, 30], sizes = [8, 1], strides = [1, 1]} : vector<8x74xf32> to vector<8x1xf32>
    %246 = vector.broadcast %245 : vector<8x1xf32> to vector<8x256xf32>
    %247 = arith.mulf %246, %244 : vector<8x256xf32>
    %248 = arith.addf %241, %247 : vector<8x256xf32>
    %249 = vector.extract_strided_slice %1 {offsets = [0, 31], sizes = [8, 1], strides = [1, 1]} : vector<8x74xf32> to vector<8x1xf32>
    %250 = vector.broadcast %249 : vector<8x1xf32> to vector<8x256xf32>
    %251 = arith.mulf %250, %221 : vector<8x256xf32>
    %252 = arith.addf %248, %251 : vector<8x256xf32>
    %c255_i32_54 = arith.constant 255 : i32
    %253 = tpu.dynamic_rotate %221 by %c255_i32_54 dim 1 : vector<8x256xf32>, i32 -> vector<8x256xf32>
    %cst_55 = arith.constant 0.000000e+00 : f32
    %254 = vector.broadcast %cst_55 : f32 to vector<8x256xf32>
    %255 = arith.select %8, %253, %254 : vector<8x256xi1>, vector<8x256xf32>
    %256 = vector.extract_strided_slice %1 {offsets = [0, 32], sizes = [8, 1], strides = [1, 1]} : vector<8x74xf32> to vector<8x1xf32>
    %257 = vector.broadcast %256 : vector<8x1xf32> to vector<8x256xf32>
    %258 = arith.mulf %257, %255 : vector<8x256xf32>
    %259 = arith.addf %252, %258 : vector<8x256xf32>
    %c241_i32_56 = arith.constant 241 : i32
    %260 = tpu.dynamic_rotate %221 by %c241_i32_56 dim 1 : vector<8x256xf32>, i32 -> vector<8x256xf32>
    %cst_57 = arith.constant 0.000000e+00 : f32
    %261 = vector.broadcast %cst_57 : f32 to vector<8x256xf32>
    %262 = arith.select %15, %260, %261 : vector<8x256xi1>, vector<8x256xf32>
    %263 = vector.extract_strided_slice %1 {offsets = [0, 33], sizes = [8, 1], strides = [1, 1]} : vector<8x74xf32> to vector<8x1xf32>
    %264 = vector.broadcast %263 : vector<8x1xf32> to vector<8x256xf32>
    %265 = arith.mulf %264, %262 : vector<8x256xf32>
    %266 = arith.addf %259, %265 : vector<8x256xf32>
    %c240_i32_58 = arith.constant 240 : i32
    %267 = tpu.dynamic_rotate %221 by %c240_i32_58 dim 1 : vector<8x256xf32>, i32 -> vector<8x256xf32>
    %cst_59 = arith.constant 0.000000e+00 : f32
    %268 = vector.broadcast %cst_59 : f32 to vector<8x256xf32>
    %269 = arith.select %12, %267, %268 : vector<8x256xi1>, vector<8x256xf32>
    %270 = vector.extract_strided_slice %1 {offsets = [0, 34], sizes = [8, 1], strides = [1, 1]} : vector<8x74xf32> to vector<8x1xf32>
    %271 = vector.broadcast %270 : vector<8x1xf32> to vector<8x256xf32>
    %272 = arith.mulf %271, %269 : vector<8x256xf32>
    %273 = arith.addf %266, %272 : vector<8x256xf32>
    %c239_i32_60 = arith.constant 239 : i32
    %274 = tpu.dynamic_rotate %221 by %c239_i32_60 dim 1 : vector<8x256xf32>, i32 -> vector<8x256xf32>
    %cst_61 = arith.constant 0.000000e+00 : f32
    %275 = vector.broadcast %cst_61 : f32 to vector<8x256xf32>
    %276 = arith.select %16, %274, %275 : vector<8x256xi1>, vector<8x256xf32>
    %277 = vector.extract_strided_slice %1 {offsets = [0, 35], sizes = [8, 1], strides = [1, 1]} : vector<8x74xf32> to vector<8x1xf32>
    %278 = vector.broadcast %277 : vector<8x1xf32> to vector<8x256xf32>
    %279 = arith.mulf %278, %276 : vector<8x256xf32>
    %280 = arith.addf %273, %279 : vector<8x256xf32>
    %281 = vector.extract_strided_slice %1 {offsets = [0, 72], sizes = [8, 1], strides = [1, 1]} : vector<8x74xf32> to vector<8x1xf32>
    %282 = vector.broadcast %281 : vector<8x1xf32> to vector<8x256xf32>
    %283 = arith.addf %282, %82 : vector<8x256xf32>
    %284 = arith.addf %283, %148 : vector<8x256xf32>
    %285 = arith.addf %284, %214 : vector<8x256xf32>
    %286 = arith.addf %285, %280 : vector<8x256xf32>
    %cst_62 = arith.constant 0.000000e+00 : f32
    %287 = vector.broadcast %cst_62 : f32 to vector<8x256xf32>
    %288 = arith.maximumf %286, %287 : vector<8x256xf32>
    %289 = arith.addf %288, %0 : vector<8x256xf32>
    %290 = vector.extract_strided_slice %289 {offsets = [0, 0], sizes = [1, 256], strides = [1, 1]} : vector<8x256xf32> to vector<1x256xf32>
    %291 = vector.shape_cast %290 : vector<1x256xf32> to vector<1x256xf32>
    %292 = vector.broadcast %291 : vector<1x256xf32> to vector<4x256xf32>
    %293 = vector.extract_strided_slice %289 {offsets = [4, 0], sizes = [1, 256], strides = [1, 1]} : vector<8x256xf32> to vector<1x256xf32>
    %294 = vector.shape_cast %293 : vector<1x256xf32> to vector<1x256xf32>
    %295 = vector.broadcast %294 : vector<1x256xf32> to vector<4x256xf32>
    %296 = tpu.concatenate %292, %295 in 0 : vector<4x256xf32>, vector<4x256xf32> -> vector<8x256xf32>
    %c17_i32_63 = arith.constant 17 : i32
    %297 = tpu.dynamic_rotate %296 by %c17_i32_63 dim 1 : vector<8x256xf32>, i32 -> vector<8x256xf32>
    %cst_64 = arith.constant 0.000000e+00 : f32
    %298 = vector.broadcast %cst_64 : f32 to vector<8x256xf32>
    %299 = arith.select %13, %297, %298 : vector<8x256xi1>, vector<8x256xf32>
    %300 = vector.extract_strided_slice %1 {offsets = [0, 36], sizes = [8, 1], strides = [1, 1]} : vector<8x74xf32> to vector<8x1xf32>
    %301 = vector.broadcast %300 : vector<8x1xf32> to vector<8x256xf32>
    %302 = arith.mulf %301, %299 : vector<8x256xf32>
    %c16_i32_65 = arith.constant 16 : i32
    %303 = tpu.dynamic_rotate %296 by %c16_i32_65 dim 1 : vector<8x256xf32>, i32 -> vector<8x256xf32>
    %cst_66 = arith.constant 0.000000e+00 : f32
    %304 = vector.broadcast %cst_66 : f32 to vector<8x256xf32>
    %305 = arith.select %10, %303, %304 : vector<8x256xi1>, vector<8x256xf32>
    %306 = vector.extract_strided_slice %1 {offsets = [0, 37], sizes = [8, 1], strides = [1, 1]} : vector<8x74xf32> to vector<8x1xf32>
    %307 = vector.broadcast %306 : vector<8x1xf32> to vector<8x256xf32>
    %308 = arith.mulf %307, %305 : vector<8x256xf32>
    %309 = arith.addf %302, %308 : vector<8x256xf32>
    %c15_i32_67 = arith.constant 15 : i32
    %310 = tpu.dynamic_rotate %296 by %c15_i32_67 dim 1 : vector<8x256xf32>, i32 -> vector<8x256xf32>
    %cst_68 = arith.constant 0.000000e+00 : f32
    %311 = vector.broadcast %cst_68 : f32 to vector<8x256xf32>
    %312 = arith.select %14, %310, %311 : vector<8x256xi1>, vector<8x256xf32>
    %313 = vector.extract_strided_slice %1 {offsets = [0, 38], sizes = [8, 1], strides = [1, 1]} : vector<8x74xf32> to vector<8x1xf32>
    %314 = vector.broadcast %313 : vector<8x1xf32> to vector<8x256xf32>
    %315 = arith.mulf %314, %312 : vector<8x256xf32>
    %316 = arith.addf %309, %315 : vector<8x256xf32>
    %c1_i32_69 = arith.constant 1 : i32
    %317 = tpu.dynamic_rotate %296 by %c1_i32_69 dim 1 : vector<8x256xf32>, i32 -> vector<8x256xf32>
    %cst_70 = arith.constant 0.000000e+00 : f32
    %318 = vector.broadcast %cst_70 : f32 to vector<8x256xf32>
    %319 = arith.select %6, %317, %318 : vector<8x256xi1>, vector<8x256xf32>
    %320 = vector.extract_strided_slice %1 {offsets = [0, 39], sizes = [8, 1], strides = [1, 1]} : vector<8x74xf32> to vector<8x1xf32>
    %321 = vector.broadcast %320 : vector<8x1xf32> to vector<8x256xf32>
    %322 = arith.mulf %321, %319 : vector<8x256xf32>
    %323 = arith.addf %316, %322 : vector<8x256xf32>
    %324 = vector.extract_strided_slice %1 {offsets = [0, 40], sizes = [8, 1], strides = [1, 1]} : vector<8x74xf32> to vector<8x1xf32>
    %325 = vector.broadcast %324 : vector<8x1xf32> to vector<8x256xf32>
    %326 = arith.mulf %325, %296 : vector<8x256xf32>
    %327 = arith.addf %323, %326 : vector<8x256xf32>
    %c255_i32_71 = arith.constant 255 : i32
    %328 = tpu.dynamic_rotate %296 by %c255_i32_71 dim 1 : vector<8x256xf32>, i32 -> vector<8x256xf32>
    %cst_72 = arith.constant 0.000000e+00 : f32
    %329 = vector.broadcast %cst_72 : f32 to vector<8x256xf32>
    %330 = arith.select %8, %328, %329 : vector<8x256xi1>, vector<8x256xf32>
    %331 = vector.extract_strided_slice %1 {offsets = [0, 41], sizes = [8, 1], strides = [1, 1]} : vector<8x74xf32> to vector<8x1xf32>
    %332 = vector.broadcast %331 : vector<8x1xf32> to vector<8x256xf32>
    %333 = arith.mulf %332, %330 : vector<8x256xf32>
    %334 = arith.addf %327, %333 : vector<8x256xf32>
    %c241_i32_73 = arith.constant 241 : i32
    %335 = tpu.dynamic_rotate %296 by %c241_i32_73 dim 1 : vector<8x256xf32>, i32 -> vector<8x256xf32>
    %cst_74 = arith.constant 0.000000e+00 : f32
    %336 = vector.broadcast %cst_74 : f32 to vector<8x256xf32>
    %337 = arith.select %15, %335, %336 : vector<8x256xi1>, vector<8x256xf32>
    %338 = vector.extract_strided_slice %1 {offsets = [0, 42], sizes = [8, 1], strides = [1, 1]} : vector<8x74xf32> to vector<8x1xf32>
    %339 = vector.broadcast %338 : vector<8x1xf32> to vector<8x256xf32>
    %340 = arith.mulf %339, %337 : vector<8x256xf32>
    %341 = arith.addf %334, %340 : vector<8x256xf32>
    %c240_i32_75 = arith.constant 240 : i32
    %342 = tpu.dynamic_rotate %296 by %c240_i32_75 dim 1 : vector<8x256xf32>, i32 -> vector<8x256xf32>
    %cst_76 = arith.constant 0.000000e+00 : f32
    %343 = vector.broadcast %cst_76 : f32 to vector<8x256xf32>
    %344 = arith.select %12, %342, %343 : vector<8x256xi1>, vector<8x256xf32>
    %345 = vector.extract_strided_slice %1 {offsets = [0, 43], sizes = [8, 1], strides = [1, 1]} : vector<8x74xf32> to vector<8x1xf32>
    %346 = vector.broadcast %345 : vector<8x1xf32> to vector<8x256xf32>
    %347 = arith.mulf %346, %344 : vector<8x256xf32>
    %348 = arith.addf %341, %347 : vector<8x256xf32>
    %c239_i32_77 = arith.constant 239 : i32
    %349 = tpu.dynamic_rotate %296 by %c239_i32_77 dim 1 : vector<8x256xf32>, i32 -> vector<8x256xf32>
    %cst_78 = arith.constant 0.000000e+00 : f32
    %350 = vector.broadcast %cst_78 : f32 to vector<8x256xf32>
    %351 = arith.select %16, %349, %350 : vector<8x256xi1>, vector<8x256xf32>
    %352 = vector.extract_strided_slice %1 {offsets = [0, 44], sizes = [8, 1], strides = [1, 1]} : vector<8x74xf32> to vector<8x1xf32>
    %353 = vector.broadcast %352 : vector<8x1xf32> to vector<8x256xf32>
    %354 = arith.mulf %353, %351 : vector<8x256xf32>
    %355 = arith.addf %348, %354 : vector<8x256xf32>
    %356 = vector.extract_strided_slice %289 {offsets = [1, 0], sizes = [1, 256], strides = [1, 1]} : vector<8x256xf32> to vector<1x256xf32>
    %357 = vector.shape_cast %356 : vector<1x256xf32> to vector<1x256xf32>
    %358 = vector.broadcast %357 : vector<1x256xf32> to vector<4x256xf32>
    %359 = vector.extract_strided_slice %289 {offsets = [5, 0], sizes = [1, 256], strides = [1, 1]} : vector<8x256xf32> to vector<1x256xf32>
    %360 = vector.shape_cast %359 : vector<1x256xf32> to vector<1x256xf32>
    %361 = vector.broadcast %360 : vector<1x256xf32> to vector<4x256xf32>
    %362 = tpu.concatenate %358, %361 in 0 : vector<4x256xf32>, vector<4x256xf32> -> vector<8x256xf32>
    %c17_i32_79 = arith.constant 17 : i32
    %363 = tpu.dynamic_rotate %362 by %c17_i32_79 dim 1 : vector<8x256xf32>, i32 -> vector<8x256xf32>
    %cst_80 = arith.constant 0.000000e+00 : f32
    %364 = vector.broadcast %cst_80 : f32 to vector<8x256xf32>
    %365 = arith.select %13, %363, %364 : vector<8x256xi1>, vector<8x256xf32>
    %366 = vector.extract_strided_slice %1 {offsets = [0, 45], sizes = [8, 1], strides = [1, 1]} : vector<8x74xf32> to vector<8x1xf32>
    %367 = vector.broadcast %366 : vector<8x1xf32> to vector<8x256xf32>
    %368 = arith.mulf %367, %365 : vector<8x256xf32>
    %c16_i32_81 = arith.constant 16 : i32
    %369 = tpu.dynamic_rotate %362 by %c16_i32_81 dim 1 : vector<8x256xf32>, i32 -> vector<8x256xf32>
    %cst_82 = arith.constant 0.000000e+00 : f32
    %370 = vector.broadcast %cst_82 : f32 to vector<8x256xf32>
    %371 = arith.select %10, %369, %370 : vector<8x256xi1>, vector<8x256xf32>
    %372 = vector.extract_strided_slice %1 {offsets = [0, 46], sizes = [8, 1], strides = [1, 1]} : vector<8x74xf32> to vector<8x1xf32>
    %373 = vector.broadcast %372 : vector<8x1xf32> to vector<8x256xf32>
    %374 = arith.mulf %373, %371 : vector<8x256xf32>
    %375 = arith.addf %368, %374 : vector<8x256xf32>
    %c15_i32_83 = arith.constant 15 : i32
    %376 = tpu.dynamic_rotate %362 by %c15_i32_83 dim 1 : vector<8x256xf32>, i32 -> vector<8x256xf32>
    %cst_84 = arith.constant 0.000000e+00 : f32
    %377 = vector.broadcast %cst_84 : f32 to vector<8x256xf32>
    %378 = arith.select %14, %376, %377 : vector<8x256xi1>, vector<8x256xf32>
    %379 = vector.extract_strided_slice %1 {offsets = [0, 47], sizes = [8, 1], strides = [1, 1]} : vector<8x74xf32> to vector<8x1xf32>
    %380 = vector.broadcast %379 : vector<8x1xf32> to vector<8x256xf32>
    %381 = arith.mulf %380, %378 : vector<8x256xf32>
    %382 = arith.addf %375, %381 : vector<8x256xf32>
    %c1_i32_85 = arith.constant 1 : i32
    %383 = tpu.dynamic_rotate %362 by %c1_i32_85 dim 1 : vector<8x256xf32>, i32 -> vector<8x256xf32>
    %cst_86 = arith.constant 0.000000e+00 : f32
    %384 = vector.broadcast %cst_86 : f32 to vector<8x256xf32>
    %385 = arith.select %6, %383, %384 : vector<8x256xi1>, vector<8x256xf32>
    %386 = vector.extract_strided_slice %1 {offsets = [0, 48], sizes = [8, 1], strides = [1, 1]} : vector<8x74xf32> to vector<8x1xf32>
    %387 = vector.broadcast %386 : vector<8x1xf32> to vector<8x256xf32>
    %388 = arith.mulf %387, %385 : vector<8x256xf32>
    %389 = arith.addf %382, %388 : vector<8x256xf32>
    %390 = vector.extract_strided_slice %1 {offsets = [0, 49], sizes = [8, 1], strides = [1, 1]} : vector<8x74xf32> to vector<8x1xf32>
    %391 = vector.broadcast %390 : vector<8x1xf32> to vector<8x256xf32>
    %392 = arith.mulf %391, %362 : vector<8x256xf32>
    %393 = arith.addf %389, %392 : vector<8x256xf32>
    %c255_i32_87 = arith.constant 255 : i32
    %394 = tpu.dynamic_rotate %362 by %c255_i32_87 dim 1 : vector<8x256xf32>, i32 -> vector<8x256xf32>
    %cst_88 = arith.constant 0.000000e+00 : f32
    %395 = vector.broadcast %cst_88 : f32 to vector<8x256xf32>
    %396 = arith.select %8, %394, %395 : vector<8x256xi1>, vector<8x256xf32>
    %397 = vector.extract_strided_slice %1 {offsets = [0, 50], sizes = [8, 1], strides = [1, 1]} : vector<8x74xf32> to vector<8x1xf32>
    %398 = vector.broadcast %397 : vector<8x1xf32> to vector<8x256xf32>
    %399 = arith.mulf %398, %396 : vector<8x256xf32>
    %400 = arith.addf %393, %399 : vector<8x256xf32>
    %c241_i32_89 = arith.constant 241 : i32
    %401 = tpu.dynamic_rotate %362 by %c241_i32_89 dim 1 : vector<8x256xf32>, i32 -> vector<8x256xf32>
    %cst_90 = arith.constant 0.000000e+00 : f32
    %402 = vector.broadcast %cst_90 : f32 to vector<8x256xf32>
    %403 = arith.select %15, %401, %402 : vector<8x256xi1>, vector<8x256xf32>
    %404 = vector.extract_strided_slice %1 {offsets = [0, 51], sizes = [8, 1], strides = [1, 1]} : vector<8x74xf32> to vector<8x1xf32>
    %405 = vector.broadcast %404 : vector<8x1xf32> to vector<8x256xf32>
    %406 = arith.mulf %405, %403 : vector<8x256xf32>
    %407 = arith.addf %400, %406 : vector<8x256xf32>
    %c240_i32_91 = arith.constant 240 : i32
    %408 = tpu.dynamic_rotate %362 by %c240_i32_91 dim 1 : vector<8x256xf32>, i32 -> vector<8x256xf32>
    %cst_92 = arith.constant 0.000000e+00 : f32
    %409 = vector.broadcast %cst_92 : f32 to vector<8x256xf32>
    %410 = arith.select %12, %408, %409 : vector<8x256xi1>, vector<8x256xf32>
    %411 = vector.extract_strided_slice %1 {offsets = [0, 52], sizes = [8, 1], strides = [1, 1]} : vector<8x74xf32> to vector<8x1xf32>
    %412 = vector.broadcast %411 : vector<8x1xf32> to vector<8x256xf32>
    %413 = arith.mulf %412, %410 : vector<8x256xf32>
    %414 = arith.addf %407, %413 : vector<8x256xf32>
    %c239_i32_93 = arith.constant 239 : i32
    %415 = tpu.dynamic_rotate %362 by %c239_i32_93 dim 1 : vector<8x256xf32>, i32 -> vector<8x256xf32>
    %cst_94 = arith.constant 0.000000e+00 : f32
    %416 = vector.broadcast %cst_94 : f32 to vector<8x256xf32>
    %417 = arith.select %16, %415, %416 : vector<8x256xi1>, vector<8x256xf32>
    %418 = vector.extract_strided_slice %1 {offsets = [0, 53], sizes = [8, 1], strides = [1, 1]} : vector<8x74xf32> to vector<8x1xf32>
    %419 = vector.broadcast %418 : vector<8x1xf32> to vector<8x256xf32>
    %420 = arith.mulf %419, %417 : vector<8x256xf32>
    %421 = arith.addf %414, %420 : vector<8x256xf32>
    %422 = vector.extract_strided_slice %289 {offsets = [2, 0], sizes = [1, 256], strides = [1, 1]} : vector<8x256xf32> to vector<1x256xf32>
    %423 = vector.shape_cast %422 : vector<1x256xf32> to vector<1x256xf32>
    %424 = vector.broadcast %423 : vector<1x256xf32> to vector<4x256xf32>
    %425 = vector.extract_strided_slice %289 {offsets = [6, 0], sizes = [1, 256], strides = [1, 1]} : vector<8x256xf32> to vector<1x256xf32>
    %426 = vector.shape_cast %425 : vector<1x256xf32> to vector<1x256xf32>
    %427 = vector.broadcast %426 : vector<1x256xf32> to vector<4x256xf32>
    %428 = tpu.concatenate %424, %427 in 0 : vector<4x256xf32>, vector<4x256xf32> -> vector<8x256xf32>
    %c17_i32_95 = arith.constant 17 : i32
    %429 = tpu.dynamic_rotate %428 by %c17_i32_95 dim 1 : vector<8x256xf32>, i32 -> vector<8x256xf32>
    %cst_96 = arith.constant 0.000000e+00 : f32
    %430 = vector.broadcast %cst_96 : f32 to vector<8x256xf32>
    %431 = arith.select %13, %429, %430 : vector<8x256xi1>, vector<8x256xf32>
    %432 = vector.extract_strided_slice %1 {offsets = [0, 54], sizes = [8, 1], strides = [1, 1]} : vector<8x74xf32> to vector<8x1xf32>
    %433 = vector.broadcast %432 : vector<8x1xf32> to vector<8x256xf32>
    %434 = arith.mulf %433, %431 : vector<8x256xf32>
    %c16_i32_97 = arith.constant 16 : i32
    %435 = tpu.dynamic_rotate %428 by %c16_i32_97 dim 1 : vector<8x256xf32>, i32 -> vector<8x256xf32>
    %cst_98 = arith.constant 0.000000e+00 : f32
    %436 = vector.broadcast %cst_98 : f32 to vector<8x256xf32>
    %437 = arith.select %10, %435, %436 : vector<8x256xi1>, vector<8x256xf32>
    %438 = vector.extract_strided_slice %1 {offsets = [0, 55], sizes = [8, 1], strides = [1, 1]} : vector<8x74xf32> to vector<8x1xf32>
    %439 = vector.broadcast %438 : vector<8x1xf32> to vector<8x256xf32>
    %440 = arith.mulf %439, %437 : vector<8x256xf32>
    %441 = arith.addf %434, %440 : vector<8x256xf32>
    %c15_i32_99 = arith.constant 15 : i32
    %442 = tpu.dynamic_rotate %428 by %c15_i32_99 dim 1 : vector<8x256xf32>, i32 -> vector<8x256xf32>
    %cst_100 = arith.constant 0.000000e+00 : f32
    %443 = vector.broadcast %cst_100 : f32 to vector<8x256xf32>
    %444 = arith.select %14, %442, %443 : vector<8x256xi1>, vector<8x256xf32>
    %445 = vector.extract_strided_slice %1 {offsets = [0, 56], sizes = [8, 1], strides = [1, 1]} : vector<8x74xf32> to vector<8x1xf32>
    %446 = vector.broadcast %445 : vector<8x1xf32> to vector<8x256xf32>
    %447 = arith.mulf %446, %444 : vector<8x256xf32>
    %448 = arith.addf %441, %447 : vector<8x256xf32>
    %c1_i32_101 = arith.constant 1 : i32
    %449 = tpu.dynamic_rotate %428 by %c1_i32_101 dim 1 : vector<8x256xf32>, i32 -> vector<8x256xf32>
    %cst_102 = arith.constant 0.000000e+00 : f32
    %450 = vector.broadcast %cst_102 : f32 to vector<8x256xf32>
    %451 = arith.select %6, %449, %450 : vector<8x256xi1>, vector<8x256xf32>
    %452 = vector.extract_strided_slice %1 {offsets = [0, 57], sizes = [8, 1], strides = [1, 1]} : vector<8x74xf32> to vector<8x1xf32>
    %453 = vector.broadcast %452 : vector<8x1xf32> to vector<8x256xf32>
    %454 = arith.mulf %453, %451 : vector<8x256xf32>
    %455 = arith.addf %448, %454 : vector<8x256xf32>
    %456 = vector.extract_strided_slice %1 {offsets = [0, 58], sizes = [8, 1], strides = [1, 1]} : vector<8x74xf32> to vector<8x1xf32>
    %457 = vector.broadcast %456 : vector<8x1xf32> to vector<8x256xf32>
    %458 = arith.mulf %457, %428 : vector<8x256xf32>
    %459 = arith.addf %455, %458 : vector<8x256xf32>
    %c255_i32_103 = arith.constant 255 : i32
    %460 = tpu.dynamic_rotate %428 by %c255_i32_103 dim 1 : vector<8x256xf32>, i32 -> vector<8x256xf32>
    %cst_104 = arith.constant 0.000000e+00 : f32
    %461 = vector.broadcast %cst_104 : f32 to vector<8x256xf32>
    %462 = arith.select %8, %460, %461 : vector<8x256xi1>, vector<8x256xf32>
    %463 = vector.extract_strided_slice %1 {offsets = [0, 59], sizes = [8, 1], strides = [1, 1]} : vector<8x74xf32> to vector<8x1xf32>
    %464 = vector.broadcast %463 : vector<8x1xf32> to vector<8x256xf32>
    %465 = arith.mulf %464, %462 : vector<8x256xf32>
    %466 = arith.addf %459, %465 : vector<8x256xf32>
    %c241_i32_105 = arith.constant 241 : i32
    %467 = tpu.dynamic_rotate %428 by %c241_i32_105 dim 1 : vector<8x256xf32>, i32 -> vector<8x256xf32>
    %cst_106 = arith.constant 0.000000e+00 : f32
    %468 = vector.broadcast %cst_106 : f32 to vector<8x256xf32>
    %469 = arith.select %15, %467, %468 : vector<8x256xi1>, vector<8x256xf32>
    %470 = vector.extract_strided_slice %1 {offsets = [0, 60], sizes = [8, 1], strides = [1, 1]} : vector<8x74xf32> to vector<8x1xf32>
    %471 = vector.broadcast %470 : vector<8x1xf32> to vector<8x256xf32>
    %472 = arith.mulf %471, %469 : vector<8x256xf32>
    %473 = arith.addf %466, %472 : vector<8x256xf32>
    %c240_i32_107 = arith.constant 240 : i32
    %474 = tpu.dynamic_rotate %428 by %c240_i32_107 dim 1 : vector<8x256xf32>, i32 -> vector<8x256xf32>
    %cst_108 = arith.constant 0.000000e+00 : f32
    %475 = vector.broadcast %cst_108 : f32 to vector<8x256xf32>
    %476 = arith.select %12, %474, %475 : vector<8x256xi1>, vector<8x256xf32>
    %477 = vector.extract_strided_slice %1 {offsets = [0, 61], sizes = [8, 1], strides = [1, 1]} : vector<8x74xf32> to vector<8x1xf32>
    %478 = vector.broadcast %477 : vector<8x1xf32> to vector<8x256xf32>
    %479 = arith.mulf %478, %476 : vector<8x256xf32>
    %480 = arith.addf %473, %479 : vector<8x256xf32>
    %c239_i32_109 = arith.constant 239 : i32
    %481 = tpu.dynamic_rotate %428 by %c239_i32_109 dim 1 : vector<8x256xf32>, i32 -> vector<8x256xf32>
    %cst_110 = arith.constant 0.000000e+00 : f32
    %482 = vector.broadcast %cst_110 : f32 to vector<8x256xf32>
    %483 = arith.select %16, %481, %482 : vector<8x256xi1>, vector<8x256xf32>
    %484 = vector.extract_strided_slice %1 {offsets = [0, 62], sizes = [8, 1], strides = [1, 1]} : vector<8x74xf32> to vector<8x1xf32>
    %485 = vector.broadcast %484 : vector<8x1xf32> to vector<8x256xf32>
    %486 = arith.mulf %485, %483 : vector<8x256xf32>
    %487 = arith.addf %480, %486 : vector<8x256xf32>
    %488 = vector.extract_strided_slice %289 {offsets = [3, 0], sizes = [1, 256], strides = [1, 1]} : vector<8x256xf32> to vector<1x256xf32>
    %489 = vector.shape_cast %488 : vector<1x256xf32> to vector<1x256xf32>
    %490 = vector.broadcast %489 : vector<1x256xf32> to vector<4x256xf32>
    %491 = vector.extract_strided_slice %289 {offsets = [7, 0], sizes = [1, 256], strides = [1, 1]} : vector<8x256xf32> to vector<1x256xf32>
    %492 = vector.shape_cast %491 : vector<1x256xf32> to vector<1x256xf32>
    %493 = vector.broadcast %492 : vector<1x256xf32> to vector<4x256xf32>
    %494 = tpu.concatenate %490, %493 in 0 : vector<4x256xf32>, vector<4x256xf32> -> vector<8x256xf32>
    %c17_i32_111 = arith.constant 17 : i32
    %495 = tpu.dynamic_rotate %494 by %c17_i32_111 dim 1 : vector<8x256xf32>, i32 -> vector<8x256xf32>
    %cst_112 = arith.constant 0.000000e+00 : f32
    %496 = vector.broadcast %cst_112 : f32 to vector<8x256xf32>
    %497 = arith.select %13, %495, %496 : vector<8x256xi1>, vector<8x256xf32>
    %498 = vector.extract_strided_slice %1 {offsets = [0, 63], sizes = [8, 1], strides = [1, 1]} : vector<8x74xf32> to vector<8x1xf32>
    %499 = vector.broadcast %498 : vector<8x1xf32> to vector<8x256xf32>
    %500 = arith.mulf %499, %497 : vector<8x256xf32>
    %c16_i32_113 = arith.constant 16 : i32
    %501 = tpu.dynamic_rotate %494 by %c16_i32_113 dim 1 : vector<8x256xf32>, i32 -> vector<8x256xf32>
    %cst_114 = arith.constant 0.000000e+00 : f32
    %502 = vector.broadcast %cst_114 : f32 to vector<8x256xf32>
    %503 = arith.select %10, %501, %502 : vector<8x256xi1>, vector<8x256xf32>
    %504 = vector.extract_strided_slice %1 {offsets = [0, 64], sizes = [8, 1], strides = [1, 1]} : vector<8x74xf32> to vector<8x1xf32>
    %505 = vector.broadcast %504 : vector<8x1xf32> to vector<8x256xf32>
    %506 = arith.mulf %505, %503 : vector<8x256xf32>
    %507 = arith.addf %500, %506 : vector<8x256xf32>
    %c15_i32_115 = arith.constant 15 : i32
    %508 = tpu.dynamic_rotate %494 by %c15_i32_115 dim 1 : vector<8x256xf32>, i32 -> vector<8x256xf32>
    %cst_116 = arith.constant 0.000000e+00 : f32
    %509 = vector.broadcast %cst_116 : f32 to vector<8x256xf32>
    %510 = arith.select %14, %508, %509 : vector<8x256xi1>, vector<8x256xf32>
    %511 = vector.extract_strided_slice %1 {offsets = [0, 65], sizes = [8, 1], strides = [1, 1]} : vector<8x74xf32> to vector<8x1xf32>
    %512 = vector.broadcast %511 : vector<8x1xf32> to vector<8x256xf32>
    %513 = arith.mulf %512, %510 : vector<8x256xf32>
    %514 = arith.addf %507, %513 : vector<8x256xf32>
    %c1_i32_117 = arith.constant 1 : i32
    %515 = tpu.dynamic_rotate %494 by %c1_i32_117 dim 1 : vector<8x256xf32>, i32 -> vector<8x256xf32>
    %cst_118 = arith.constant 0.000000e+00 : f32
    %516 = vector.broadcast %cst_118 : f32 to vector<8x256xf32>
    %517 = arith.select %6, %515, %516 : vector<8x256xi1>, vector<8x256xf32>
    %518 = vector.extract_strided_slice %1 {offsets = [0, 66], sizes = [8, 1], strides = [1, 1]} : vector<8x74xf32> to vector<8x1xf32>
    %519 = vector.broadcast %518 : vector<8x1xf32> to vector<8x256xf32>
    %520 = arith.mulf %519, %517 : vector<8x256xf32>
    %521 = arith.addf %514, %520 : vector<8x256xf32>
    %522 = vector.extract_strided_slice %1 {offsets = [0, 67], sizes = [8, 1], strides = [1, 1]} : vector<8x74xf32> to vector<8x1xf32>
    %523 = vector.broadcast %522 : vector<8x1xf32> to vector<8x256xf32>
    %524 = arith.mulf %523, %494 : vector<8x256xf32>
    %525 = arith.addf %521, %524 : vector<8x256xf32>
    %c255_i32_119 = arith.constant 255 : i32
    %526 = tpu.dynamic_rotate %494 by %c255_i32_119 dim 1 : vector<8x256xf32>, i32 -> vector<8x256xf32>
    %cst_120 = arith.constant 0.000000e+00 : f32
    %527 = vector.broadcast %cst_120 : f32 to vector<8x256xf32>
    %528 = arith.select %8, %526, %527 : vector<8x256xi1>, vector<8x256xf32>
    %529 = vector.extract_strided_slice %1 {offsets = [0, 68], sizes = [8, 1], strides = [1, 1]} : vector<8x74xf32> to vector<8x1xf32>
    %530 = vector.broadcast %529 : vector<8x1xf32> to vector<8x256xf32>
    %531 = arith.mulf %530, %528 : vector<8x256xf32>
    %532 = arith.addf %525, %531 : vector<8x256xf32>
    %c241_i32_121 = arith.constant 241 : i32
    %533 = tpu.dynamic_rotate %494 by %c241_i32_121 dim 1 : vector<8x256xf32>, i32 -> vector<8x256xf32>
    %cst_122 = arith.constant 0.000000e+00 : f32
    %534 = vector.broadcast %cst_122 : f32 to vector<8x256xf32>
    %535 = arith.select %15, %533, %534 : vector<8x256xi1>, vector<8x256xf32>
    %536 = vector.extract_strided_slice %1 {offsets = [0, 69], sizes = [8, 1], strides = [1, 1]} : vector<8x74xf32> to vector<8x1xf32>
    %537 = vector.broadcast %536 : vector<8x1xf32> to vector<8x256xf32>
    %538 = arith.mulf %537, %535 : vector<8x256xf32>
    %539 = arith.addf %532, %538 : vector<8x256xf32>
    %c240_i32_123 = arith.constant 240 : i32
    %540 = tpu.dynamic_rotate %494 by %c240_i32_123 dim 1 : vector<8x256xf32>, i32 -> vector<8x256xf32>
    %cst_124 = arith.constant 0.000000e+00 : f32
    %541 = vector.broadcast %cst_124 : f32 to vector<8x256xf32>
    %542 = arith.select %12, %540, %541 : vector<8x256xi1>, vector<8x256xf32>
    %543 = vector.extract_strided_slice %1 {offsets = [0, 70], sizes = [8, 1], strides = [1, 1]} : vector<8x74xf32> to vector<8x1xf32>
    %544 = vector.broadcast %543 : vector<8x1xf32> to vector<8x256xf32>
    %545 = arith.mulf %544, %542 : vector<8x256xf32>
    %546 = arith.addf %539, %545 : vector<8x256xf32>
    %c239_i32_125 = arith.constant 239 : i32
    %547 = tpu.dynamic_rotate %494 by %c239_i32_125 dim 1 : vector<8x256xf32>, i32 -> vector<8x256xf32>
    %cst_126 = arith.constant 0.000000e+00 : f32
    %548 = vector.broadcast %cst_126 : f32 to vector<8x256xf32>
    %549 = arith.select %16, %547, %548 : vector<8x256xi1>, vector<8x256xf32>
    %550 = vector.extract_strided_slice %1 {offsets = [0, 71], sizes = [8, 1], strides = [1, 1]} : vector<8x74xf32> to vector<8x1xf32>
    %551 = vector.broadcast %550 : vector<8x1xf32> to vector<8x256xf32>
    %552 = arith.mulf %551, %549 : vector<8x256xf32>
    %553 = arith.addf %546, %552 : vector<8x256xf32>
    %554 = vector.extract_strided_slice %1 {offsets = [0, 73], sizes = [8, 1], strides = [1, 1]} : vector<8x74xf32> to vector<8x1xf32>
    %555 = vector.broadcast %554 : vector<8x1xf32> to vector<8x256xf32>
    %556 = arith.addf %555, %355 : vector<8x256xf32>
    %557 = arith.addf %556, %421 : vector<8x256xf32>
    %558 = arith.addf %557, %487 : vector<8x256xf32>
    %559 = arith.addf %558, %553 : vector<8x256xf32>
    %cst_127 = arith.constant 0.000000e+00 : f32
    %560 = vector.broadcast %cst_127 : f32 to vector<8x256xf32>
    %561 = arith.maximumf %559, %560 : vector<8x256xf32>
    %c0_128 = arith.constant 0 : index
    %c0_129 = arith.constant 0 : index
    %562 = vector.load %arg3[%c0_128, %c0_129] : memref<8x256xf32, #tpu.memory_space<vmem>>, vector<8x256xf32>
    tpu.vector_store %arg3[%c0_128, %c0_129], %561 {strides = array<i32>} : memref<8x256xf32, #tpu.memory_space<vmem>>, vector<8x256xf32>,
    return
  }
  func.func @transform_0(%arg0: i32) -> (i32, i32) {
    %c0_i32 = arith.constant 0 : i32
    %c0_i32_0 = arith.constant 0 : i32
    %c0_i32_1 = arith.constant 0 : i32
    return %c0_i32, %c0_i32_0 : i32, i32
  }
  func.func @transform_1(%arg0: i32) -> (i32, i32) {
    %c0_i32 = arith.constant 0 : i32
    %c0_i32_0 = arith.constant 0 : i32
    %c0_i32_1 = arith.constant 0 : i32
    return %c0_i32, %c0_i32_0 : i32, i32
  }
  func.func @transform_2(%arg0: i32) -> (i32, i32) {
    %c0_i32 = arith.constant 0 : i32
    %c0_i32_0 = arith.constant 0 : i32
    %c0_i32_1 = arith.constant 0 : i32
    return %c0_i32, %c0_i32_0 : i32, i32
  }
}

</mosaic_0001>

<bundles_post_ra>
// kernel: resblock_pallas.1
= control target key start
LH: loop header
LB: loop body
LE: loop exit
PB: predicated region body
PF: predicated region fallthrough
CT: control target
= control target key end

     0   :  { %v3102_v0 = vlaneseq  ;;  %v1457_v1 = vmov 0   ;;  %v1458_v4 = vmov 2   ;;  %vm3152_vm0 = vcmask 1043456   ;;  %s1460_s15 = smov 17   ;;  %s1461_s16 = smov 16   ;;  %s3099_s1 = inlined_call_operand.vmem [shape: f32[8,74], index: 1, kind: input, shape index: {}]   ;;  %s3100_s0 = inlined_call_operand.vmem [shape: f32[8,256], index: 0, kind: input, shape index: {}]   ;;  %s3101_s2 = inlined_call_operand.vmem [shape: f32[8,256], index: 2, kind: output, shape index: {}]  }
   0x1   :  { %1379 = vset.pattern.permute.xlu1 %v1457_v1  ;;  %v1557_v2 = vld [vmem:[%s3099_s1] sm:$0xff]  ;;  %1381 = vset.pattern.permute.xlu0 %v1458_v4  ;;  %v1571_v6 = vld [vmem:[%s3100_s0 + $0x8] sm:$0xff]  ;;  %v1459_v9 = vmov 1   ;;  %v1462_v16 = vmov 4   ;;  %s1463_s17 = smov 15   ;;  %s1464_s18 = smov 1  }
   0x2   :  { %65 = vperm.xlu1 %1379, %v1557_v2   ;;  %v1561_v3 = vshrl.u32 %v3102_v0, 7  ;;  %v1566_v5 = vld [vmem:[%s3100_s0] sm:$0xff]  ;;  %v1465_v17 = vmov 3   ;;  %s1466_s19 = smov 127   ;;  %v1467_v18 = vmov 5   ;;  %v1468_v19 = vmov 6  }
   0x3   :  { %s1469_s20 = smov 113   ;;  %v1470_v20 = vmov 13   ;;  %s1471_s21 = smov 112   ;;  %v1472_v21 = vmov 7   ;;  %v1474_v24 = vmov 8   ;;  %v1475_v30 = vmov 9  }
   0x4   :  { %v1574_v7 = vsub.s32 0, %v1561_v3  ;;  %v1577_v8 = vsub.s32 4, %v1561_v3  ;;  %v1629_v22 = vsub.s32 1, %v1561_v3  ;;  %v1632_v23 = vsub.s32 5, %v1561_v3  ;;  %s1473_s22 = smov 111  }
   0x5   :  { %v1476_v32 = vmov 10   ;;  %v1477_v33 = vmov 11   ;;  %v1478_v34 = vmov 12   ;;  %v1479_v35 = vmov 15  }
   0x6   :  { %3160 = vst [vmem:[#allocation2_spill] sm:$0xff] %v1574_v7  ;;  %3161 = vst [vmem:[#allocation3_spill] sm:$0xff] %v1577_v8  ;;  %1380 = vset.pattern.permute.xlu1 %v1459_v9  ;;  %v38_v10 = vrot.slane %v1566_v5, %v1574_v7  ;;  %v46_v11 = vrot.slane %v1566_v5, %v1577_v8  ;;  %v42_v12 = vrot.slane %v1571_v6, %v1574_v7  ;;  %v1480_v36 = vmov 16  }
   0x7   :  { %v50_v13 = vrot.slane %v1571_v6, %v1577_v8  ;;  %80 = vperm.xlu1 %1380, %v1557_v2   ;;  %3162 = vst [vmem:[#allocation4_spill] sm:$0xff] %v1629_v22  ;;  %3163 = vst [vmem:[#allocation5_spill] sm:$0xff] %v1632_v23  ;;  %v200_v25 = vrot.slane %v1566_v5, %v1629_v22  ;;  %v208_v26 = vrot.slane %v1566_v5, %v1632_v23  ;;  %v1481_v37 = vmov 17  }
   0x8   :  { %v1589_v14 = vsel %vm3152_vm0, %v38_v10, %v46_v11  ;;  %v204_v28 = vrot.slane %v1571_v6, %v1629_v22  ;;  %v212_v29 = vrot.slane %v1571_v6, %v1632_v23  ;;  %v1482_v38 = vmov 14  }
   0x9   :  { %54 = vrot.lane.b32.xlu0 %v1589_v14, %s1460_s15  ;;  %v1594_v15 = vsel %vm3152_vm0, %v42_v12, %v50_v13  ;;  %v1644_v27 = vsel %vm3152_vm0, %v200_v25, %v208_v26  ;;  %v1483_v39 = vmov 18   ;;  %v1484_v40 = vmov 19  }
   0xa   :  { %v1654_v31 = vsel %vm3152_vm0, %v204_v28, %v212_v29  ;;  %v1485_v41 = vmov 22   ;;  %v1486_v42 = vmov 20   ;;  %v1694_v43 = vsub.s32 2, %v1561_v3 }
   0xb   :  { %70 = vrot.lane.b32.xlu1 %v1589_v14, %s1461_s16  ;;  %v1697_v44 = vsub.s32 6, %v1561_v3  ;;  %v1487_v47 = vmov 21   ;;  %v1488_v51 = vmov 24   ;;  %v1489_v54 = vmov 25  }
   0xc   :  { %1383 = vset.pattern.permute.xlu1 %v1462_v16  ;;  %3164 = vst [vmem:[#allocation6_spill] sm:$0xff] %v1694_v43  ;;  %v356_v45 = vrot.slane %v1571_v6, %v1694_v43  ;;  %v352_v48 = vrot.slane %v1566_v5, %v1694_v43  ;;  %v1490_v56 = vmov 26   ;;  %v1491_v58 = vmov 27  }
   0xd   :  { %56 = vrot.lane.b32.xlu0 %v1594_v15, %s1460_s15  ;;  %3165 = vst [vmem:[#allocation7_spill] sm:$0xff] %v1697_v44  ;;  %v364_v46 = vrot.slane %v1571_v6, %v1697_v44  ;;  %v360_v49 = vrot.slane %v1566_v5, %v1697_v44  ;;  %v1492_v60 = vmov 28   ;;  %v1493_v63 = vmov 29  }
   0xe   :  { %v1759_v4 = vsub.s32 3, %v1561_v3  ;;  %v1762_v9 = vsub.s32 7, %v1561_v3  ;;  %v1494_v12 = vmov 30   ;;  %v1495_v16 = vmov 23  }
   0xf   :  { %89 = vrot.lane.b32.xlu1 %v1594_v15, %s1463_s17  ;;  %v1711_v50 = vsel %vm3152_vm0, %v356_v45, %v364_v46  ;;  %v1718_v52 = vsel %vm3152_vm0, %v352_v48, %v360_v49  ;;  %v1498_v25 = vmov 34   ;;  %v1499_v29 = vmov 35  }
  0x10   :  { %3166 = vst [vmem:[#allocation8_spill] sm:$0xff] %v1711_v50  ;;  %3167 = vst [vmem:[#allocation9_spill] sm:$0xff] %v1718_v52  ;;  %v508_v10 = vrot.slane %v1571_v6, %v1759_v4  ;;  %v516_v11 = vrot.slane %v1571_v6, %v1762_v9  ;;  %v504_v3 = vrot.slane %v1566_v5, %v1759_v4  ;;  %v1500_v48 = vmov 32  }
  0x11   :  { %72 = vrot.lane.b32.xlu0 %v1594_v15, %s1461_s16  ;;  %3168 = vst [vmem:[#allocation10_spill] sm:$0xff] %v1759_v4  ;;  %3169 = vst [vmem:[#allocation11_spill] sm:$0xff] %v1762_v9  ;;  %v1503_v44 = vmov 37  }
  0x13   :  { %104 = vrot.lane.b32.xlu1 %v1589_v14, %s1464_s18 }
  0x15   :  { %87 = vrot.lane.b32.xlu0 %v1589_v14, %s1463_s17 }
  0x17   :  { %106 = vrot.lane.b32.xlu1 %v1594_v15, %s1464_s18 }
  0x19   :  { %97 = vperm.xlu0 %1381, %v1557_v2  }
  0x1b   :  { %122 = vperm.xlu1 %1383, %v1557_v2  }
  0x1d   :  { %1382 = vset.pattern.permute.xlu0 %v1465_v17  ;;  %v512_v17 = vrot.slane %v1566_v5, %v1762_v9  ;;  %v1497_v5 = vmov 31   ;;  %v1502_v9 = vmov 36  }
  0x1e   :  { %114 = vperm.xlu0 %1382, %v1557_v2  }
  0x1f   :  { %129 = vrot.lane.b32.xlu1 %v1589_v14, %s1466_s19 }
  0x20   :  { %1384 = vset.pattern.permute.xlu1 %v1467_v18  ;;  %v1779_v18 = vsel %vm3152_vm0, %v508_v10, %v516_v11 }
  0x21   :  { %3170 = vst [vmem:[#allocation12_spill] sm:$0xff] %v1779_v18 }
  0x22   :  { %131 = vrot.lane.b32.xlu0 %v1594_v15, %s1466_s19 }
  0x23   :  { %139 = vperm.xlu1 %1384, %v1557_v2   ;;  %1385 = vset.pattern.permute.xlu0 %v1468_v19  ;;  %v1496_v19 = vmov 33  }
  0x26   :  { %146 = vrot.lane.b32.xlu0 %v1589_v14, %s1469_s20 }
  0x27   :  { %148 = vrot.lane.b32.xlu1 %v1594_v15, %s1469_s20 }
  0x28   :  { %1392 = vset.pattern.permute.xlu1 %v1470_v20  ;;  %v1787_v20 = vsel %vm3152_vm0, %v504_v3, %v512_v17 }
  0x29   :  { %3171 = vst [vmem:[#allocation13_spill] sm:$0xff] %v1787_v20 }
  0x2a   :  { %156 = vperm.xlu0 %1385, %v1557_v2  }
  0x2b   :  { %163 = vrot.lane.b32.xlu1 %v1589_v14, %s1471_s21 }
  0x2e   :  { %1386 = vset.pattern.permute.xlu0 %v1472_v21 }
  0x2f   :  { %165 = vrot.lane.b32.xlu1 %v1594_v15, %s1471_s21  ;;  %173 = vperm.xlu0 %1386, %v1557_v2  }
  0x33   :  { %180 = vrot.lane.b32.xlu1 %v1589_v14, %s1473_s22  ;;  %1387 = vset.pattern.permute.xlu0 %v1474_v24 }
  0x34   :  { %190 = vperm.xlu0 %1387, %v1557_v2  }
  0x37   :  { %182 = vrot.lane.b32.xlu1 %v1594_v15, %s1473_s22 }
  0x38   :  { %1388 = vset.pattern.permute.xlu0 %v1475_v30 }
  0x39   :  { %224 = vperm.xlu0 %1388, %v1557_v2  }
  0x3b   :  { %215 = vrot.lane.b32.xlu1 %v1644_v27, %s1460_s15 }
  0x3d   :  { %1389 = vset.pattern.permute.xlu0 %v1476_v32 }
  0x3e   :  { %238 = vperm.xlu0 %1389, %v1557_v2  }
  0x3f   :  { %217 = vrot.lane.b32.xlu1 %v1654_v31, %s1460_s15 }
  0x42   :  { %1390 = vset.pattern.permute.xlu0 %v1477_v33 }
  0x43   :  { %229 = vrot.lane.b32.xlu1 %v1644_v27, %s1461_s16  ;;  %254 = vperm.xlu0 %1390, %v1557_v2  }
  0x47   :  { %231 = vrot.lane.b32.xlu1 %v1654_v31, %s1461_s16  ;;  %1391 = vset.pattern.permute.xlu0 %v1478_v34 }
  0x48   :  { %270 = vperm.xlu0 %1391, %v1557_v2  }
  0x4b   :  { %245 = vrot.lane.b32.xlu1 %v1644_v27, %s1463_s17 }
  0x4c   :  { %287 = vrot.lane.b32.xlu0 %v1654_v31, %s1466_s19 }
  0x4d   :  { %1394 = vset.pattern.permute.xlu0 %v1479_v35 }
  0x4f   :  { %247 = vrot.lane.b32.xlu1 %v1654_v31, %s1463_s17 }
  0x50   :  { %301 = vrot.lane.b32.xlu0 %v1644_v27, %s1469_s20 }
  0x53   :  { %261 = vrot.lane.b32.xlu1 %v1644_v27, %s1464_s18 }
  0x54   :  { %310 = vperm.xlu0 %1394, %v1557_v2  }
  0x57   :  { %263 = vrot.lane.b32.xlu1 %v1654_v31, %s1464_s18 }
  0x58   :  { %1395 = vset.pattern.permute.xlu0 %v1480_v36 }
  0x59   :  { %326 = vperm.xlu0 %1395, %v1557_v2  }
  0x5b   :  { %278 = vperm.xlu1 %1392, %v1557_v2  }
  0x5d   :  { %1396 = vset.pattern.permute.xlu0 %v1481_v37 }
  0x5e   :  { %342 = vperm.xlu0 %1396, %v1557_v2  }
  0x5f   :  { %285 = vrot.lane.b32.xlu1 %v1644_v27, %s1466_s19 }
  0x60   :  { %1393 = vset.pattern.permute.xlu1 %v1482_v38 }
  0x62   :  { %1397 = vset.pattern.permute.xlu0 %v1483_v39 }
  0x63   :  { %294 = vperm.xlu1 %1393, %v1557_v2   ;;  %376 = vperm.xlu0 %1397, %v1557_v2  }
  0x67   :  { %303 = vrot.lane.b32.xlu1 %v1654_v31, %s1469_s20  ;;  %1398 = vset.pattern.permute.xlu0 %v1484_v40 }
  0x68   :  { %390 = vperm.xlu0 %1398, %v1557_v2   ;;  %1401 = vset.pattern.permute.xlu1 %v1485_v41 }
  0x6b   :  { %317 = vrot.lane.b32.xlu1 %v1644_v27, %s1471_s21 }
  0x6c   :  { %1399 = vset.pattern.permute.xlu0 %v1486_v42 }
  0x6d   :  { %406 = vperm.xlu0 %1399, %v1557_v2  }
  0x6f   :  { %319 = vrot.lane.b32.xlu1 %v1654_v31, %s1471_s21 }
  0x71   :  { %1400 = vset.pattern.permute.xlu0 %v1487_v47 }
  0x72   :  { %422 = vperm.xlu0 %1400, %v1557_v2  }
  0x73   :  { %333 = vrot.lane.b32.xlu1 %v1644_v27, %s1473_s22 }
  0x76   :  { %439 = vrot.lane.b32.xlu0 %v1711_v50, %s1466_s19 }
  0x77   :  { %335 = vrot.lane.b32.xlu1 %v1654_v31, %s1473_s22  ;;  %1403 = vset.pattern.permute.xlu0 %v1488_v51 }
  0x7a   :  { %453 = vrot.lane.b32.xlu0 %v1718_v52, %s1469_s20 }
  0x7b   :  { %367 = vrot.lane.b32.xlu1 %v1718_v52, %s1460_s15  ;;  %v1838_v38 = vpop.permute.xlu0 %54 }
  0x7e   :  { %462 = vperm.xlu0 %1403, %v1557_v2  }
  0x7f   :  { %369 = vrot.lane.b32.xlu1 %v1711_v50, %s1460_s15  ;;  %v1844_v40 = vpop.permute.xlu0 %56 }
  0x81   :  { %v1727_v53 = vpop.permute.xlu1 %65 }
  0x82   :  { %1404 = vset.pattern.permute.xlu0 %v1489_v54 }
  0x83   :  { %381 = vrot.lane.b32.xlu1 %v1718_v52, %s1461_s16  ;;  %478 = vperm.xlu0 %1404, %v1557_v2   ;;  %v1850_v42 = vpop.permute.xlu0 %72 }
  0x86   :  { %v1732_v55 = vpop.permute.xlu1 %80 }
  0x87   :  { %383 = vrot.lane.b32.xlu1 %v1711_v50, %s1461_s16  ;;  %1405 = vset.pattern.permute.xlu0 %v1490_v56  ;;  %v1859_v47 = vpop.permute.xlu0 %87  ;;  %v1501_v56 = vmov 72  }
  0x88   :  { %494 = vperm.xlu0 %1405, %v1557_v2  }
  0x8a   :  { %v1737_v57 = vpop.permute.xlu1 %70 }
  0x8b   :  { %397 = vrot.lane.b32.xlu1 %v1718_v52, %s1463_s17 }
  0x8c   :  { %1406 = vset.pattern.permute.xlu0 %v1491_v58 }
  0x8d   :  { %528 = vperm.xlu0 %1406, %v1557_v2  }
  0x8e   :  { %v1742_v59 = vpop.permute.xlu1 %89 }
  0x8f   :  { %399 = vrot.lane.b32.xlu1 %v1711_v50, %s1463_s17 }
  0x91   :  { %1407 = vset.pattern.permute.xlu0 %v1492_v60 }
  0x92   :  { %v1746_v61 = vpop.permute.xlu1 %104  ;;  %542 = vperm.xlu0 %1407, %v1557_v2  }
  0x93   :  { %413 = vrot.lane.b32.xlu1 %v1718_v52, %s1464_s18 }
  0x96   :  { %v1751_v62 = vpop.permute.xlu1 %106  ;;  %1408 = vset.pattern.permute.xlu0 %v1493_v63 }
  0x97   :  { %415 = vrot.lane.b32.xlu1 %v1711_v50, %s1464_s18  ;;  %558 = vperm.xlu0 %1408, %v1557_v2  }
  0x98   :  { %v1864_v51 = vpop.permute.xlu0 %97 }
  0x9a   :  { %v1756_v1 = vpop.permute.xlu1 %122 }
  0x9b   :  { %430 = vperm.xlu1 %1401, %v1557_v2   ;;  %1409 = vset.pattern.permute.xlu0 %v1494_v12 }
  0x9c   :  { %574 = vperm.xlu0 %1409, %v1557_v2  }
  0x9d   :  { %v1870_v58 = vpop.permute.xlu0 %114 }
  0x9e   :  { %v1770_v13 = vpop.permute.xlu1 %129 }
  0x9f   :  { %437 = vrot.lane.b32.xlu1 %v1718_v52, %s1466_s19 }
  0xa0   :  { %1402 = vset.pattern.permute.xlu1 %v1495_v16  ;;  %591 = vrot.lane.b32.xlu0 %v1779_v18, %s1466_s19 }
  0xa1   :  { %1412 = vset.pattern.permute.xlu0 %v1496_v19  ;;  %v1880_v10 = vpop.permute.xlu0 %131 }
  0xa2   :  { %v1783_v6 = vpop.permute.xlu1 %139 }
  0xa3   :  { %446 = vperm.xlu1 %1402, %v1557_v2  }
  0xa4   :  { %605 = vrot.lane.b32.xlu0 %v1787_v20, %s1469_s20 }
  0xa5   :  { %v1886_v12 = vpop.permute.xlu0 %146 }
  0xa6   :  { %v1791_v21 = vpop.permute.xlu1 %148 }
  0xa7   :  { %455 = vrot.lane.b32.xlu1 %v1711_v50, %s1469_s20 }
  0xa8   :  { %1410 = vset.pattern.permute.xlu1 %v1497_v5  ;;  %614 = vperm.xlu0 %1412, %v1557_v2  }
  0xa9   :  { %v1895_v17 = vpop.permute.xlu0 %156 }
  0xaa   :  { %v1796_v24 = vpop.permute.xlu1 %163 }
  0xab   :  { %469 = vrot.lane.b32.xlu1 %v1718_v52, %s1471_s21 }
  0xac   :  { %1413 = vset.pattern.permute.xlu0 %v1498_v25 }
  0xad   :  { %630 = vperm.xlu0 %1413, %v1557_v2  }
  0xae   :  { %v1800_v26 = vpop.permute.xlu1 %165  ;;  %v1899_v5 = vpop.permute.xlu0 %173 }
  0xaf   :  { %471 = vrot.lane.b32.xlu1 %v1711_v50, %s1471_s21 }
  0xb1   :  { %1414 = vset.pattern.permute.xlu0 %v1499_v29 }
  0xb2   :  { %v1805_v28 = vpop.permute.xlu1 %180  ;;  %646 = vperm.xlu0 %1414, %v1557_v2  }
  0xb3   :  { %485 = vrot.lane.b32.xlu1 %v1718_v52, %s1473_s22  ;;  %v1903_v29 = vpop.permute.xlu0 %190 }
  0xb6   :  { %v1810_v30 = vpop.permute.xlu1 %182  ;;  %1417 = vset.pattern.permute.xlu0 %v1503_v44 }
  0xb7   :  { %487 = vrot.lane.b32.xlu1 %v1711_v50, %s1473_s22 }
  0xba   :  { %v1814_v32 = vpop.permute.xlu1 %215 }
  0xbb   :  { %519 = vrot.lane.b32.xlu1 %v1787_v20, %s1460_s15 }
  0xbe   :  { %v1818_v33 = vpop.permute.xlu1 %217 }
  0xbf   :  { %521 = vrot.lane.b32.xlu1 %v1779_v18, %s1460_s15 }
  0xc2   :  { %v1822_v34 = vpop.permute.xlu1 %229 }
  0xc3   :  { %533 = vrot.lane.b32.xlu1 %v1787_v20, %s1461_s16 }
  0xc6   :  { %v1826_v35 = vpop.permute.xlu1 %231 }
  0xc7   :  { %535 = vrot.lane.b32.xlu1 %v1779_v18, %s1461_s16 }
  0xca   :  { %v1830_v36 = vpop.permute.xlu1 %245 }
  0xcb   :  { %549 = vrot.lane.b32.xlu1 %v1787_v20, %s1463_s17 }
  0xce   :  { %v1834_v37 = vpop.permute.xlu1 %247 }
  0xcf   :  { %551 = vrot.lane.b32.xlu1 %v1779_v18, %s1463_s17 }
  0xd2   :  { %v1840_v39 = vpop.permute.xlu1 %261 }
  0xd3   :  { %565 = vrot.lane.b32.xlu1 %v1787_v20, %s1464_s18 }
  0xd6   :  { %v1846_v41 = vpop.permute.xlu1 %263 }
  0xd7   :  { %567 = vrot.lane.b32.xlu1 %v1779_v18, %s1464_s18 }
  0xda   :  { %v1852_v45 = vpop.permute.xlu1 %278 }
  0xdb   :  { %582 = vperm.xlu1 %1410, %v1557_v2  }
  0xde   :  { %v1855_v46 = vpop.permute.xlu1 %285 }
  0xdf   :  { %589 = vrot.lane.b32.xlu1 %v1787_v20, %s1466_s19 }
  0xe0   :  { %1411 = vset.pattern.permute.xlu1 %v1500_v48 }
  0xe2   :  { %v1861_v49 = vpop.permute.xlu1 %294 }
  0xe3   :  { %598 = vperm.xlu1 %1411, %v1557_v2  }
  0xe6   :  { %v1866_v54 = vpop.permute.xlu1 %303 }
  0xe7   :  { %3172 = vst [vmem:[#allocation14_spill] sm:$0xff] %v1866_v54  ;;  %607 = vrot.lane.b32.xlu1 %v1779_v18, %s1469_s20 }
  0xe8   :  { %1415 = vset.pattern.permute.xlu1 %v1501_v56  ;;  %v1907_v56 = vpop.permute.xlu0 %224 }
  0xea   :  { %v1872_v60 = vpop.permute.xlu1 %317 }
  0xeb   :  { %3173 = vst [vmem:[#allocation15_spill] sm:$0xff] %v1872_v60  ;;  %621 = vrot.lane.b32.xlu1 %v1787_v20, %s1471_s21 }
  0xec   :  { %v1911_v4 = vpop.permute.xlu0 %238 }
  0xee   :  { %v1876_v63 = vpop.permute.xlu1 %319 }
  0xef   :  { %3174 = vst [vmem:[#allocation16_spill] sm:$0xff] %v1876_v63  ;;  %623 = vrot.lane.b32.xlu1 %v1779_v18, %s1471_s21 }
  0xf0   :  { %v1915_v43 = vpop.permute.xlu0 %254 }
  0xf2   :  { %v1882_v11 = vpop.permute.xlu1 %333 }
  0xf3   :  { %3175 = vst [vmem:[#allocation17_spill] sm:$0xff] %v1882_v11  ;;  %637 = vrot.lane.b32.xlu1 %v1787_v20, %s1473_s22 }
  0xf4   :  { %v1919_v22 = vpop.permute.xlu0 %270 }
  0xf6   :  { %v1888_v16 = vpop.permute.xlu1 %335 }
  0xf7   :  { %3176 = vst [vmem:[#allocation18_spill] sm:$0xff] %v1888_v16  ;;  %639 = vrot.lane.b32.xlu1 %v1779_v18, %s1473_s22  ;;  %v3191_v16 = vlaneseq }
  0xf8   :  { %v1923_v7 = vpop.permute.xlu0 %287 }
  0xfa   :  { %v1892_v3 = vpop.permute.xlu1 %367 }
  0xfb   :  { %3177 = vst [vmem:[#allocation19_spill] sm:$0xff] %v1892_v3  ;;  %654 = vperm.xlu1 %1415, %v1557_v2  }
  0xfc   :  { %v1927_v20 = vpop.permute.xlu0 %301 }
  0xfd   :  { %3185 = vst [vmem:[#allocation27_spill] sm:$0xff] %v1927_v20 }
  0xfe   :  { %v1897_v19 = vpop.permute.xlu1 %369 }
  0xff   :  { %3178 = vst [vmem:[#allocation20_spill] sm:$0xff] %v1897_v19  ;;  %1416 = vset.pattern.permute.xlu1 %v1502_v9 }
 0x100   :  { %v1931_v50 = vpop.permute.xlu0 %310 }
 0x101   :  { %3187 = vst [vmem:[#allocation29_spill] sm:$0xff] %v1931_v50 }
 0x102   :  { %v1901_v25 = vpop.permute.xlu1 %381 }
 0x104   :  { %v1935_v44 = vpop.permute.xlu0 %326 }
 0x105   :  { %3189 = vst [vmem:[#allocation31_spill] sm:$0xff] %v1935_v44 }
 0x106   :  { %v1905_v48 = vpop.permute.xlu1 %383 }
 0x107   :  { %3179 = vst [vmem:[#allocation21_spill] sm:$0xff] %v1905_v48 }
 0x10a   :  { %v1909_v0 = vpop.permute.xlu1 %397 }
 0x10b   :  { %3180 = vst [vmem:[#allocation22_spill] sm:$0xff] %v1909_v0 }
 0x10e   :  { %v1913_v2 = vpop.permute.xlu1 %399 }
 0x10f   :  { %3181 = vst [vmem:[#allocation23_spill] sm:$0xff] %v1913_v2 }
 0x112   :  { %v1917_v23 = vpop.permute.xlu1 %413 }
 0x113   :  { %3182 = vst [vmem:[#allocation24_spill] sm:$0xff] %v1917_v23  ;;  %v1940_v23 = vand.u32 127, %v3191_v16 }
 0x115   :  { %vm74_vm1 = vcmp.lt.s32.totalorder %v1940_v23, 16  ;;  %vm3155_vm2 = vcmp.lt.s32.totalorder %v1940_v23, 17  ;;  %vm3153_vm4 = vcmp.ge.s32.totalorder %v1940_v23, 16  ;;  %vm3156_vm5 = vcmp.lt.s32.totalorder %v1940_v23, 15 }
 0x116   :  { %v1921_v8 = vpop.permute.xlu1 %415  ;;  %v59_v44 = vsel %vm3155_vm2, %v1838_v38, %v1844_v40  ;;  %vm3154_vm9 = vcmp.lt.s32.totalorder %v1940_v23, 1  ;;  %v92_v2 = vsel %vm3156_vm5, %v1859_v47, %v1742_v59  ;;  %v93_v3 = vsel %vm3156_vm5, %v1742_v59, %v1859_v47 }
 0x117   :  { %3183 = vst [vmem:[#allocation25_spill] sm:$0xff] %v1921_v8  ;;  %v1942_v8 = vpop.permute.xlu0 %342  ;;  %v109_v47 = vsel %vm3154_vm9, %v1746_v61, %v1751_v62  ;;  %vm3159_vm12 = vcmp.lt.s32.totalorder %v1940_v23, 127  ;;  %vm3157_vm13 = vcmp.lt.s32.totalorder %v1940_v23, 113  ;;  %vm167_vm15 = vcmp.lt.s32.totalorder %v1940_v23, 112 }
 0x118   :  { %3192 = vst [vmem:[#allocation33_spill] sm:$0xff] %v1942_v8  ;;  %vm184_vm0 = vcmp.lt.s32.totalorder %v1940_v23, 111 }
 0x11a   :  { %v1925_v18 = vpop.permute.xlu1 %430 }
 0x11b   :  { %3184 = vst [vmem:[#allocation26_spill] sm:$0xff] %v1925_v18  ;;  %v1947_v18 = vadd.s32 128, %v1940_v23  ;;  %v1950_v60 = vpop.permute.xlu0 %376 }
 0x11c   :  { %3194 = vst [vmem:[#allocation35_spill] sm:$0xff] %v1950_v60 }
 0x11d   :  { %vm3158_vm14 = vcmp.lt.s32.totalorder %v1947_v18, 240 }
 0x11e   :  { %v1929_v9 = vpop.permute.xlu1 %437 }
 0x11f   :  { %3186 = vst [vmem:[#allocation28_spill] sm:$0xff] %v1929_v9  ;;  %v17_v9 = vand.u32 15, %v1940_v23 }
 0x121   :  { %vm1957_vm3 = vcmp.ne.s32.totalorder %v17_v9, 0  ;;  %vm1971_vm6 = vcmp.ne.s32.totalorder %v17_v9, 15 }
 0x122   :  { %v1933_v52 = vpop.permute.xlu1 %446  ;;  %vm1991_vm8 = vmand %vm3153_vm4, %vm1957_vm3 }
 0x123   :  { %3188 = vst [vmem:[#allocation30_spill] sm:$0xff] %v1933_v52  ;;  %v18_v52 = vand.u32 15, %v1947_v18  ;;  %vm2022_vm11 = vmand %vm3153_vm4, %vm1971_vm6 }
 0x125   :  { %vm1983_vm7 = vcmp.ne.s32.totalorder %v18_v52, 0  ;;  %vm2014_vm10 = vcmp.ne.s32.totalorder %v18_v52, 15 }
 0x126   :  { %v1937_v11 = vpop.permute.xlu1 %455 }
 0x127   :  { %3190 = vst [vmem:[#allocation32_spill] sm:$0xff] %v1937_v11 }
 0x12a   :  { %v1944_v63 = vpop.permute.xlu1 %469 }
 0x12b   :  { %3193 = vst [vmem:[#allocation34_spill] sm:$0xff] %v1944_v63  ;;  %v1962_v63 = vpop.permute.xlu0 %390 }
 0x12c   :  { %3198 = vst [vmem:[#allocation37_spill] sm:$0xff] %v1962_v63  ;;  %v75_v63 = vsel %vm74_vm1, %v1737_v57, %v1850_v42 }
 0x12d   :  { %v84_v52 = vmul.f32 %v1732_v55, %v75_v63 }
 0x12e   :  { %v1952_v50 = vpop.permute.xlu1 %471 }
 0x12f   :  { %3195 = vst [vmem:[#allocation36_spill] sm:$0xff] %v1952_v50  ;;  %v76_v50 = vsel %vm74_vm1, %v1850_v42, %v1737_v57 }
 0x132   :  { %v1964_v8 = vpop.permute.xlu1 %485 }
 0x133   :  { %3199 = vst [vmem:[#allocation38_spill] sm:$0xff] %v1964_v8  ;;  %v60_v8 = vsel %vm3155_vm2, %v1844_v40, %v1838_v38  ;;  %v77_v38 = vsel %vm3153_vm4, %v76_v50, 0.0  ;;  %v2002_v40 = vpop.permute.xlu0 %406 }
 0x134   :  { %3206 = vst [vmem:[#allocation39_spill] sm:$0xff] %v2002_v40  ;;  %v61_v42 = vsel %vm1991_vm8, %v60_v8, 0.0  ;;  %v83_v59 = vmul.f32 %v1732_v55, %v77_v38  ;;  %v110_v40 = vsel %vm3154_vm9, %v1751_v62, %v1746_v61  ;;  %v94_v8 = vsel %vm2022_vm11, %v93_v3, 0.0 }
 0x135   :  { %v68_v55 = vmul.f32 %v1727_v53, %v61_v42  ;;  %v100_v20 = vmul.f32 %v1864_v51, %v94_v8  ;;  %v111_v61 = vsel %vm1957_vm3, %v110_v40, 0.0  ;;  %v112_v62 = vsel %vm1983_vm7, %v109_v47, 0.0 }
 0x136   :  { %v2004_v0 = vpop.permute.xlu1 %487  ;;  %v134_v40 = vsel %vm3159_vm12, %v1770_v13, %v1880_v10  ;;  %v220_v47 = vsel %vm3155_vm2, %v1818_v33, %v1814_v32 }
 0x137   :  { %3207 = vst [vmem:[#allocation40_spill] sm:$0xff] %v2004_v0  ;;  %v62_v0 = vsel %vm1983_vm7, %v59_v44, 0.0  ;;  %v95_v44 = vsel %vm2014_vm10, %v92_v2, 0.0  ;;  %v2044_v19 = vpop.permute.xlu0 %422  ;;  %v85_v2 = vadd.f32 %v83_v59, %v68_v55  ;;  %v249_v55 = vsel %vm3156_vm5, %v1830_v36, %v1834_v37 }
 0x138   :  { %3212 = vst [vmem:[#allocation41_spill] sm:$0xff] %v2044_v19  ;;  %v69_v63 = vmul.f32 %v1727_v53, %v62_v0  ;;  %v101_v54 = vmul.f32 %v1864_v51, %v95_v44  ;;  %v117_v19 = vmul.f32 %v1870_v58, %v111_v61  ;;  %v136_v44 = vsel %vm1971_vm6, %v134_v40, 0.0 }
 0x139   :  { %v102_v0 = vadd.f32 %v100_v20, %v85_v2 }
 0x13a   :  { %v2046_v38 = vpop.permute.xlu1 %519  ;;  %v86_v3 = vadd.f32 %v84_v52, %v69_v63  ;;  %v135_v52 = vsel %vm3159_vm12, %v1880_v10, %v1770_v13  ;;  %v151_v10 = vsel %vm3157_vm13, %v1886_v12, %v1791_v21  ;;  %v266_v63 = vsel %vm3154_vm9, %v1846_v41, %v1840_v39 }
 0x13b   :  { %3213 = vst [vmem:[#allocation42_spill] sm:$0xff] %v2046_v38  ;;  %v118_v38 = vmul.f32 %v1870_v58, %v112_v62  ;;  %v2058_v48 = vpop.permute.xlu0 %439  ;;  %v119_v51 = vadd.f32 %v117_v19, %v102_v0  ;;  %v234_v58 = vsel %vm74_vm1, %v1826_v35, %v1822_v34  ;;  %v126_v19 = vmul.f32 %v1756_v1, %v1594_v15 }
 0x13c   :  { %v103_v53 = vadd.f32 %v101_v54, %v86_v3  ;;  %v125_v54 = vmul.f32 %v1756_v1, %v1589_v14  ;;  %v250_v14 = vsel %vm3156_vm5, %v1834_v37, %v1830_v36  ;;  %v235_v13 = vsel %vm3153_vm4, %v234_v58, 0.0  ;;  %vm2136_vm4 = vmand %vm3158_vm14, %vm1983_vm7 }
 0x13d   :  { %v137_v62 = vsel %vm2014_vm10, %v135_v52, 0.0  ;;  %v221_v3 = vsel %vm1991_vm8, %v220_v47, 0.0  ;;  %v142_v36 = vmul.f32 %v1783_v6, %v136_v44  ;;  %v152_v37 = vsel %vm3157_vm13, %v1791_v21, %v1886_v12 }
 0x13e   :  { %v2060_v42 = vpop.permute.xlu1 %521  ;;  %v120_v8 = vadd.f32 %v118_v38, %v103_v53  ;;  %v127_v15 = vadd.f32 %v125_v54, %v119_v51  ;;  %v219_v38 = vsel %vm3155_vm2, %v1814_v32, %v1818_v33  ;;  %v233_v32 = vsel %vm74_vm1, %v1822_v34, %v1826_v35 }
 0x13f   :  { %v2072_v59 = vpop.permute.xlu0 %453  ;;  %v251_v33 = vsel %vm2022_vm11, %v250_v14, 0.0  ;;  %v241_v34 = vmul.f32 %v1911_v4, %v235_v13  ;;  %v265_v35 = vsel %vm3154_vm9, %v1840_v39, %v1846_v41  ;;  %v153_v21 = vsel %vm1957_vm3, %v151_v10, 0.0  ;;  %vm2202_vm9 = vmand %vm3158_vm14, %vm2014_vm10 }
 0x140   :  { %v128_v1 = vadd.f32 %v126_v19, %v120_v8  ;;  %v222_v12 = vsel %vm1983_vm7, %v219_v38, 0.0  ;;  %v252_v53 = vsel %vm2014_vm10, %v249_v55, 0.0  ;;  %v267_v51 = vsel %vm1957_vm3, %v266_v63, 0.0 }
 0x141   :  { %v169_v8 = vsel %vm167_vm15, %v1800_v26, %v1796_v24  ;;  %v227_v39 = vmul.f32 %v1907_v56, %v221_v3  ;;  %v242_v41 = vmul.f32 %v1911_v4, %v233_v32  ;;  %v257_v40 = vmul.f32 %v1915_v43, %v251_v33 }
 0x142   :  { %v2074_v20 = vpop.permute.xlu1 %533  ;;  %v143_v54 = vmul.f32 %v1783_v6, %v137_v62  ;;  %v154_v19 = vsel %vm2136_vm4, %v152_v37, 0.0  ;;  %v168_v52 = vsel %vm167_vm15, %v1796_v24, %v1800_v26  ;;  %v268_v47 = vsel %vm1983_vm7, %v265_v35, 0.0 }
 0x143   :  { %v2145_v0 = vpop.permute.xlu0 %462  ;;  %v228_v14 = vmul.f32 %v1907_v56, %v222_v12  ;;  %v243_v4 = vadd.f32 %v241_v34, %v227_v39  ;;  %v258_v44 = vmul.f32 %v1915_v43, %v252_v53  ;;  %v273_v13 = vmul.f32 %v1919_v22, %v267_v51 }
 0x144   :  { %v144_v6 = vadd.f32 %v142_v36, %v127_v15  ;;  %v159_v38 = vmul.f32 %v1895_v17, %v153_v21  ;;  %v171_v55 = vsel %vm3158_vm14, %v169_v8, 0.0  ;;  %v185_v24 = vsel %vm184_vm0, %v1805_v28, %v1810_v30 }
 0x145   :  { %v244_v26 = vadd.f32 %v242_v41, %v228_v14  ;;  %v259_v56 = vadd.f32 %v257_v40, %v243_v4  ;;  %v274_v63 = vmul.f32 %v1919_v22, %v268_v47  ;;  %v289_v43 = vsel %vm3159_vm12, %v1855_v46, %v1923_v7  ;;  %v3219_v4 = vld [vmem:[#allocation14_spill] sm:$0xff] }
 0x146   :  { %v2115_v61 = vpop.permute.xlu1 %535  ;;  %v145_v62 = vadd.f32 %v143_v54, %v128_v1  ;;  %v160_v3 = vmul.f32 %v1895_v17, %v154_v19  ;;  %v176_v32 = vmul.f32 %v1899_v5, %v168_v52  ;;  %v186_v33 = vsel %vm184_vm0, %v1810_v30, %v1805_v28 }
 0x147   :  { %v2176_v10 = vpop.permute.xlu0 %478  ;;  %v260_v36 = vadd.f32 %v258_v44, %v244_v26  ;;  %v275_v37 = vadd.f32 %v273_v13, %v259_v56  ;;  %v281_v17 = vmul.f32 %v1852_v45, %v1644_v27  ;;  %v290_v1 = vsel %vm3159_vm12, %v1923_v7, %v1855_v46  ;;  %v3220_v44 = vld [vmem:[#allocation27_spill] sm:$0xff]  ;;  %v3224_v56 = vld [vmem:[#allocation22_spill] sm:$0xff] }
 0x148   :  { %v161_v28 = vadd.f32 %v159_v38, %v144_v6  ;;  %v177_v30 = vmul.f32 %v1899_v5, %v171_v55  ;;  %v187_v35 = vsel %vm1971_vm6, %v185_v24, 0.0  ;;  %v291_v21 = vsel %vm1971_vm6, %v289_v43, 0.0  ;;  %v3222_v38 = vld [vmem:[#allocation19_spill] sm:$0xff] }
 0x149   :  { %v188_v12 = vsel %vm2202_vm9, %v186_v33, 0.0  ;;  %v276_v27 = vadd.f32 %v274_v63, %v260_v36  ;;  %v282_v53 = vmul.f32 %v1852_v45, %v1654_v31  ;;  %v297_v7 = vmul.f32 %v1861_v49, %v291_v21  ;;  %v3218_v31 = vld [vmem:[#allocation21_spill] sm:$0xff]  ;;  %v3223_v26 = vld [vmem:[#allocation23_spill] sm:$0xff] }
 0x14a   :  { %v2162_v58 = vpop.permute.xlu1 %549  ;;  %v162_v51 = vadd.f32 %v160_v3, %v145_v62  ;;  %v292_v5 = vsel %vm2014_vm10, %v290_v1, 0.0  ;;  %v178_v8 = vadd.f32 %v176_v32, %v161_v28  ;;  %v283_v39 = vadd.f32 %v281_v17, %v275_v37  ;;  %v3225_v3 = vld [vmem:[#allocation15_spill] sm:$0xff]  ;;  %v3226_v32 = vld [vmem:[#allocation16_spill] sm:$0xff] }
 0x14b   :  { %v2212_v34 = vpop.permute.xlu0 %494  ;;  %v298_v41 = vmul.f32 %v1861_v49, %v292_v5  ;;  %v193_v19 = vmul.f32 %v1903_v29, %v187_v35  ;;  %v194_v52 = vmul.f32 %v1903_v29, %v188_v12  ;;  %v386_v45 = vsel %vm74_vm1, %v3218_v31, %v1901_v25  ;;  %v3221_v29 = vld [vmem:[#allocation20_spill] sm:$0xff] }
 0x14c   :  { %v179_v54 = vadd.f32 %v177_v30, %v162_v51  ;;  %v284_v47 = vadd.f32 %v282_v53, %v276_v27  ;;  %v299_v14 = vadd.f32 %v297_v7, %v283_v39  ;;  %v305_v13 = vsel %vm3157_vm13, %v3220_v44, %v3219_v4  ;;  %v3228_v30 = vld [vmem:[#allocation25_spill] sm:$0xff]  ;;  %v3229_v35 = vld [vmem:[#allocation24_spill] sm:$0xff] }
 0x14d   :  { %v306_v49 = vsel %vm3157_vm13, %v3219_v4, %v3220_v44  ;;  %v371_v55 = vsel %vm3155_vm2, %v3222_v38, %v3221_v29  ;;  %v372_v24 = vsel %vm3155_vm2, %v3221_v29, %v3222_v38  ;;  %v401_v63 = vsel %vm3156_vm5, %v3224_v56, %v3223_v26  ;;  %v3234_v38 = vld [vmem:[#allocation35_spill] sm:$0xff] }
 0x14e   :  { %v2190_v15 = vpop.permute.xlu1 %551  ;;  %v402_v43 = vsel %vm3156_vm5, %v3223_v26, %v3224_v56  ;;  %v300_v62 = vadd.f32 %v298_v41, %v284_v47  ;;  %v322_v33 = vsel %vm167_vm15, %v3226_v32, %v3225_v3  ;;  %v385_v36 = vsel %vm74_vm1, %v1901_v25, %v3218_v31  ;;  %v3232_v41 = vld [vmem:[#allocation37_spill] sm:$0xff]  ;;  %v3235_v26 = vld [vmem:[#allocation39_spill] sm:$0xff] }
 0x14f   :  { %v2229_v40 = vpop.permute.xlu0 %528  ;;  %vm3227_vm2 = vcmp.ge.s32.totalorder %v1940_v23, 16  ;;  %v307_v1 = vsel %vm1957_vm3, %v305_v13, 0.0  ;;  %v308_v28 = vsel %vm2136_vm4, %v306_v49, 0.0  ;;  %vm3230_vm5 = vcmp.lt.s32.totalorder %v1940_v23, 1  ;;  %v3233_v47 = vld [vmem:[#allocation29_spill] sm:$0xff] }
 0x150   :  { %v387_v37 = vsel %vm3227_vm2, %v386_v45, 0.0  ;;  %v417_v21 = vsel %vm3230_vm5, %v3229_v35, %v3228_v30  ;;  %vm3231_vm13 = vmmov %vm3230_vm5  ;;  %v373_v12 = vsel %vm1991_vm8, %v372_v24, 0.0  ;;  %v374_v27 = vsel %vm1983_vm7, %v371_v55, 0.0 }
 0x151   :  { %v418_v25 = vsel %vm3231_vm13, %v3228_v30, %v3229_v35  ;;  %v403_v53 = vsel %vm2022_vm11, %v402_v43, 0.0  ;;  %v404_v7 = vsel %vm2014_vm10, %v401_v63, 0.0  ;;  %v321_v5 = vsel %vm167_vm15, %v3225_v3, %v3226_v32  ;;  %v3236_v43 = vld [vmem:[#allocation31_spill] sm:$0xff] }
 0x152   :  { %v2224_v46 = vpop.permute.xlu1 %565  ;;  %v324_v39 = vsel %vm3158_vm14, %v322_v33, 0.0  ;;  %v393_v31 = vmul.f32 %v3232_v41, %v387_v37  ;;  %v394_v45 = vmul.f32 %v3232_v41, %v385_v36  ;;  %v313_v4 = vmul.f32 %v3233_v47, %v307_v1  ;;  %v3237_v33 = vld [vmem:[#allocation18_spill] sm:$0xff]  ;;  %v3238_v36 = vld [vmem:[#allocation17_spill] sm:$0xff] }
 0x153   :  { %v2273_v17 = vpop.permute.xlu0 %542  ;;  %v314_v44 = vmul.f32 %v3233_v47, %v308_v28  ;;  %v419_v13 = vsel %vm1957_vm3, %v418_v25, 0.0  ;;  %v420_v49 = vsel %vm1983_vm7, %v417_v21, 0.0  ;;  %v379_v55 = vmul.f32 %v3234_v38, %v373_v12  ;;  %v3239_v21 = vld [vmem:[#allocation41_spill] sm:$0xff]  ;;  %v3240_v47 = vld [vmem:[#allocation28_spill] sm:$0xff] }
 0x154   :  { %v380_v24 = vmul.f32 %v3234_v38, %v374_v27  ;;  %v409_v56 = vmul.f32 %v3235_v26, %v403_v53  ;;  %v410_v63 = vmul.f32 %v3235_v26, %v404_v7  ;;  %v329_v3 = vmul.f32 %v3236_v43, %v321_v5 }
 0x155   :  { %v330_v32 = vmul.f32 %v3236_v43, %v324_v39  ;;  %v337_v37 = vsel %vm184_vm0, %v3238_v36, %v3237_v33  ;;  %v338_v1 = vsel %vm184_vm0, %v3237_v33, %v3238_v36  ;;  %v395_v30 = vadd.f32 %v393_v31, %v379_v55  ;;  %v3243_v55 = vld [vmem:[#allocation8_spill] sm:$0xff] }
 0x156   :  { %v2245_v6 = vpop.permute.xlu1 %567  ;;  %v396_v35 = vadd.f32 %v394_v45, %v380_v24  ;;  %v425_v25 = vmul.f32 %v3239_v21, %v419_v13  ;;  %v426_v12 = vmul.f32 %v3239_v21, %v420_v49  ;;  %v315_v27 = vadd.f32 %v313_v4, %v299_v14  ;;  %v3242_v13 = vld [vmem:[#allocation26_spill] sm:$0xff] }
 0x157   :  { %v2311_v29 = vpop.permute.xlu0 %558  ;;  %v316_v53 = vadd.f32 %v314_v44, %v300_v62  ;;  %v2331_v5 = vadd.f32 %v193_v19, %v178_v8  ;;  %v411_v39 = vadd.f32 %v409_v56, %v395_v30  ;;  %v441_v38 = vsel %vm3159_vm12, %v3240_v47, %v2058_v48  ;;  %v3241_v44 = vld [vmem:[#allocation9_spill] sm:$0xff] }
 0x158   :  { %v412_v41 = vadd.f32 %v410_v63, %v396_v35  ;;  %v2337_v26 = vadd.f32 %v194_v52, %v179_v54  ;;  %v2339_v31 = vadd.f32 %v329_v3, %v315_v27  ;;  %v339_v14 = vsel %vm1971_vm6, %v337_v37, 0.0  ;;  %v3244_v63 = vld [vmem:[#allocation32_spill] sm:$0xff] }
 0x159   :  { %v2341_v45 = vadd.f32 %v330_v32, %v316_v53  ;;  %v340_v8 = vsel %vm2202_vm9, %v338_v1, 0.0  ;;  %v427_v62 = vadd.f32 %v425_v25, %v411_v39  ;;  %v442_v54 = vsel %vm3159_vm12, %v2058_v48, %v3240_v47  ;;  %v3246_v48 = vld [vmem:[#allocation42_spill] sm:$0xff] }
 0x15a   :  { %v2295_v51 = vpop.permute.xlu1 %582  ;;  %v428_v4 = vadd.f32 %v426_v12, %v412_v41  ;;  %v538_v52 = vsel %vm74_vm1, %v2115_v61, %v2074_v20  ;;  %v433_v49 = vmul.f32 %v3242_v13, %v3241_v44  ;;  %v434_v24 = vmul.f32 %v3242_v13, %v3243_v55  ;;  %v3251_v1 = vld [vmem:[#allocation30_spill] sm:$0xff]  ;;  %v3256_v55 = vld [vmem:[#allocation33_spill] sm:$0xff] }
 0x15b   :  { %v575_v7 = vpop.permute.xlu0 %574  ;;  %v443_v56 = vsel %vm1971_vm6, %v441_v38, 0.0  ;;  %vm3245_vm2 = vcmp.lt.s32.totalorder %v1940_v23, 113  ;;  %vm3247_vm5 = vcmp.lt.s32.totalorder %v1940_v23, 17  ;;  %vm3249_vm14 = vcmp.lt.s32.totalorder %v1940_v23, 15 }
 0x15c   :  { %v457_v43 = vsel %vm3245_vm2, %v2072_v59, %v3244_v63  ;;  %v523_v3 = vsel %vm3247_vm5, %v3246_v48, %v2060_v42  ;;  %vm3248_vm13 = vmmov %vm3247_vm5  ;;  %v553_v33 = vsel %vm3249_vm14, %v2162_v58, %v2190_v15  ;;  %v444_v37 = vsel %vm2014_vm10, %v442_v54, 0.0 }
 0x15d   :  { %v524_v32 = vsel %vm3248_vm13, %v2060_v42, %v3246_v48  ;;  %vm3250_vm12 = vmmov %vm3249_vm14  ;;  %v449_v30 = vmul.f32 %v3251_v1, %v443_v56  ;;  %v537_v42 = vsel %vm74_vm1, %v2074_v20, %v2115_v61  ;;  %vm3252_vm2 = vcmp.ge.s32.totalorder %v1940_v23, 16 }
 0x15e   :  { %v2327_v28 = vpop.permute.xlu1 %589  ;;  %v554_v36 = vsel %vm3250_vm12, %v2190_v15, %v2162_v58  ;;  %v539_v35 = vsel %vm3252_vm2, %v538_v52, 0.0  ;;  %vm3253_vm14 = vcmp.lt.s32.totalorder %v1940_v23, 113  ;;  %v459_v15 = vsel %vm1957_vm3, %v457_v43, 0.0 }
 0x15f   :  { %v592_v21 = vpop.permute.xlu0 %591  ;;  %v458_v58 = vsel %vm3253_vm14, %v3244_v63, %v2072_v59  ;;  %vm3254_vm12 = vcmp.lt.s32.totalorder %v1940_v23, 1  ;;  %v525_v61 = vsel %vm1991_vm8, %v524_v32, 0.0  ;;  %v526_v27 = vsel %vm1983_vm7, %v523_v3, 0.0 }
 0x160   :  { %v569_v12 = vsel %vm3254_vm12, %v2224_v46, %v2245_v6  ;;  %vm3255_vm5 = vmmov %vm3254_vm12  ;;  %v555_v59 = vsel %vm2022_vm11, %v554_v36, 0.0  ;;  %v556_v53 = vsel %vm2014_vm10, %v553_v33, 0.0  ;;  %v435_v39 = vadd.f32 %v433_v49, %v427_v62 }
 0x161   :  { %v570_v20 = vsel %vm3255_vm5, %v2245_v6, %v2224_v46  ;;  %v450_v41 = vmul.f32 %v3251_v1, %v444_v37  ;;  %v545_v47 = vmul.f32 %v2273_v17, %v539_v35  ;;  %v546_v38 = vmul.f32 %v2273_v17, %v537_v42  ;;  %vm3263_vm12 = vmmov %vm3253_vm14 }
 0x162   :  { %v2347_v19 = vpop.permute.xlu1 %598  ;;  %v460_v46 = vsel %vm2136_vm4, %v458_v58, 0.0  ;;  %v465_v6 = vmul.f32 %v2145_v0, %v459_v15  ;;  %v571_v54 = vsel %vm1957_vm3, %v570_v20, 0.0  ;;  %v572_v52 = vsel %vm1983_vm7, %v569_v12, 0.0  ;;  %v3258_v58 = vld [vmem:[#allocation36_spill] sm:$0xff]  ;;  %v3260_v12 = vld [vmem:[#allocation38_spill] sm:$0xff] }
 0x163   :  { %v531_v62 = vmul.f32 %v2229_v40, %v525_v61  ;;  %v532_v13 = vmul.f32 %v2229_v40, %v526_v27  ;;  %v561_v49 = vmul.f32 %v2311_v29, %v555_v59  ;;  %v562_v17 = vmul.f32 %v2311_v29, %v556_v53  ;;  %v606_v3 = vpop.permute.xlu0 %605  ;;  %v3257_v40 = vld [vmem:[#allocation34_spill] sm:$0xff] }
 0x164   :  { %v345_v56 = vmul.f32 %v3256_v55, %v339_v14  ;;  %v346_v63 = vmul.f32 %v3256_v55, %v340_v8  ;;  %v436_v43 = vadd.f32 %v434_v24, %v428_v4  ;;  %v451_v48 = vadd.f32 %v449_v30, %v435_v39  ;;  %v3259_v14 = vld [vmem:[#allocation40_spill] sm:$0xff]  ;;  %v3264_v39 = vld [vmem:[#allocation13_spill] sm:$0xff] }
 0x165   :  { %v547_v32 = vadd.f32 %v545_v47, %v531_v62  ;;  %v548_v33 = vadd.f32 %v546_v38, %v532_v13  ;;  %v577_v36 = vmul.f32 %v575_v7, %v571_v54  ;;  %v578_v37 = vmul.f32 %v575_v7, %v572_v52  ;;  %v3265_v47 = vld [vmem:[#allocation12_spill] sm:$0xff] }
 0x166   :  { %v608_v25 = vpop.permute.xlu1 %607  ;;  %v452_v1 = vadd.f32 %v450_v41, %v436_v43  ;;  %v466_v42 = vmul.f32 %v2145_v0, %v460_v46  ;;  %v467_v35 = vadd.f32 %v465_v6, %v451_v48  ;;  %v474_v29 = vsel %vm167_vm15, %v3258_v58, %v3257_v40 }
 0x167   :  { %v489_v8 = vsel %vm184_vm0, %v3260_v12, %v3259_v14  ;;  %v563_v4 = vadd.f32 %v561_v49, %v547_v32  ;;  %v564_v24 = vadd.f32 %v562_v17, %v548_v33  ;;  %vm3261_vm13 = vcmp.lt.s32.totalorder %v1940_v23, 127  ;;  %v615_v27 = vpop.permute.xlu0 %614 }
 0x168   :  { %v593_v7 = vsel %vm3261_vm13, %v2327_v28, %v592_v21  ;;  %v490_v0 = vsel %vm184_vm0, %v3259_v14, %v3260_v12  ;;  %vm3262_vm2 = vmmov %vm3261_vm13  ;;  %v609_v20 = vsel %vm3253_vm14, %v606_v3, %v608_v25  ;;  %v610_v61 = vsel %vm3263_vm12, %v608_v25, %v606_v3 }
 0x169   :  { %v594_v30 = vsel %vm3262_vm2, %v592_v21, %v2327_v28  ;;  %v579_v59 = vadd.f32 %v577_v36, %v563_v4  ;;  %v580_v53 = vadd.f32 %v578_v37, %v564_v24  ;;  %v585_v41 = vmul.f32 %v2295_v51, %v3264_v39 }
 0x16a   :  { %v622_v44 = vpop.permute.xlu1 %621  ;;  %v586_v38 = vmul.f32 %v2295_v51, %v3265_v47  ;;  %v468_v46 = vadd.f32 %v466_v42, %v452_v1  ;;  %v473_v28 = vsel %vm167_vm15, %v3257_v40, %v3258_v58  ;;  %vm3266_vm5 = vcmp.lt.s32.totalorder %v1947_v18, 240 }
 0x16b   :  { %v476_v21 = vsel %vm3266_vm5, %v474_v29, 0.0  ;;  %v595_v25 = vsel %vm1971_vm6, %v593_v7, 0.0  ;;  %v596_v54 = vsel %vm2014_vm10, %v594_v30, 0.0  ;;  %v611_v52 = vsel %vm1957_vm3, %v609_v20, 0.0  ;;  %v631_v43 = vpop.permute.xlu0 %630  ;;  %vm3267_vm13 = vmmov %vm3266_vm5 }
 0x16c   :  { %v612_v51 = vsel %vm2136_vm4, %v610_v61, 0.0  ;;  %v491_v13 = vsel %vm1971_vm6, %v489_v8, 0.0  ;;  %v492_v49 = vsel %vm2202_vm9, %v490_v0, 0.0  ;;  %v601_v17 = vmul.f32 %v2347_v19, %v595_v25 }
 0x16d   :  { %v602_v55 = vmul.f32 %v2347_v19, %v596_v54  ;;  %v481_v48 = vmul.f32 %v2176_v10, %v473_v28  ;;  %v482_v3 = vmul.f32 %v2176_v10, %v476_v21  ;;  %v587_v32 = vadd.f32 %v585_v41, %v579_v59 }
 0x16e   :  { %v624_v15 = vpop.permute.xlu1 %623  ;;  %v588_v33 = vadd.f32 %v586_v38, %v580_v53  ;;  %v617_v36 = vmul.f32 %v615_v27, %v611_v52  ;;  %v618_v37 = vmul.f32 %v615_v27, %v612_v51  ;;  %v497_v58 = vmul.f32 %v2212_v34, %v491_v13  ;;  %v3268_v13 = vld [vmem:[#allocation2_spill] sm:$0xff] }
 0x16f   :  { %v626_v62 = vsel %vm167_vm15, %v624_v15, %v622_v44  ;;  %v625_v1 = vsel %vm167_vm15, %v622_v44, %v624_v15  ;;  %v498_v19 = vmul.f32 %v2212_v34, %v492_v49  ;;  %v603_v14 = vadd.f32 %v601_v17, %v587_v32  ;;  %v647_v15 = vpop.permute.xlu0 %646  ;;  %v3269_v17 = vld [vmem:[#allocation3_spill] sm:$0xff] }
 0x170   :  { %v628_v42 = vsel %vm3267_vm13, %v626_v62, 0.0  ;;  %v604_v12 = vadd.f32 %v602_v55, %v588_v33  ;;  %v347_v4 = vadd.f32 %v345_v56, %v2339_v31  ;;  %v348_v24 = vadd.f32 %v346_v63, %v2341_v45  ;;  %v2532_v33 = vld [vmem:[%s3099_s1] sm:$0xff] }
 0x171   :  { %v633_v34 = vmul.f32 %v631_v43, %v625_v1  ;;  %v634_v7 = vmul.f32 %v631_v43, %v628_v42  ;;  %v483_v0 = vadd.f32 %v481_v48, %v467_v35  ;;  %v484_v30 = vadd.f32 %v482_v3, %v468_v46 }
 0x172   :  { %v638_v6 = vpop.permute.xlu1 %637  ;;  %v619_v20 = vadd.f32 %v617_v36, %v603_v14  ;;  %v620_v61 = vadd.f32 %v618_v37, %v604_v12  ;;  %vm3270_vm2 = vcmask 1043456   ;;  %v1504_v36 = vmov 40  }
 0x173   :  { %v499_v47 = vadd.f32 %v497_v58, %v483_v0  ;;  %v500_v38 = vadd.f32 %v498_v19, %v484_v30  ;;  %vm3271_vm14 = vmmov %vm3270_vm2  ;;  %v1505_v37 = vmov 38   ;;  %v1506_v1 = vmov 39  }
 0x174   :  { %v635_v28 = vadd.f32 %v633_v34, %v619_v20  ;;  %v636_v21 = vadd.f32 %v634_v7, %v620_v61  ;;  %v1507_v42 = vmov 42   ;;  %v1509_v58 = vmov 43   ;;  %vm3274_vm12 = vmmov %vm3270_vm2 }
 0x175   :  { %v1510_v19 = vmov 44   ;;  %v1513_v14 = vmov 46   ;;  %v1514_v12 = vmov 47   ;;  %vm3275_vm5 = vmmov %vm3270_vm2  ;;  %v1516_v20 = vmov 51  }
 0x176   :  { %v640_v40 = vpop.permute.xlu1 %639  ;;  %v1517_v61 = vmov 52   ;;  %vm3278_vm13 = vmmov %vm3270_vm2 }
 0x177   :  { %v641_v29 = vsel %vm184_vm0, %v638_v6, %v640_v40  ;;  %v642_v10 = vsel %vm184_vm0, %v640_v40, %v638_v6  ;;  %v1508_v40 = vmov 41  }
 0x178   :  { %v643_v8 = vsel %vm1971_vm6, %v641_v29, 0.0  ;;  %v644_v44 = vsel %vm2202_vm9, %v642_v10, 0.0  ;;  %v1511_v29 = vmov 49   ;;  %v1512_v10 = vmov 45  }
 0x179   :  { %v649_v59 = vmul.f32 %v647_v15, %v643_v8  ;;  %v650_v53 = vmul.f32 %v647_v15, %v644_v44  ;;  %v3272_v8 = vld [vmem:[#allocation4_spill] sm:$0xff]  ;;  %v3273_v15 = vld [vmem:[#allocation5_spill] sm:$0xff] }
 0x17a   :  { %v655_v27 = vpop.permute.xlu1 %654 }
 0x17b   :  { %v657_v39 = vadd.f32 %v655_v27, %v2331_v5  ;;  %v658_v41 = vadd.f32 %v655_v27, %v2337_v26  ;;  %v651_v45 = vadd.f32 %v649_v59, %v635_v28  ;;  %v652_v63 = vadd.f32 %v650_v53, %v636_v21  ;;  %v1454_v5 = vld [vmem:[%s3100_s0] sm:$0xff]  ;;  %v1455_v26 = vld [vmem:[%s3100_s0 + $0x8] sm:$0xff] }
 0x17c   :  { %v1518_v27 = vmov 53   ;;  %v1519_v59 = vmov 54   ;;  %v1520_v53 = vmov 55   ;;  %v3277_v21 = vld [vmem:[#allocation7_spill] sm:$0xff] }
 0x17d   :  { %v659_v31 = vadd.f32 %v657_v39, %v347_v4  ;;  %v660_v56 = vadd.f32 %v658_v41, %v348_v24  ;;  %v1515_v24 = vmov 48   ;;  %v1521_v39 = vmov 56  }
 0x17e   :  { %v1522_v41 = vmov 50  }
 0x17f   :  { %v661_v25 = vadd.f32 %v659_v31, %v499_v47  ;;  %v662_v35 = vadd.f32 %v660_v56, %v500_v38  ;;  %v1523_v47 = vmov 57   ;;  %v3276_v38 = vld [vmem:[#allocation6_spill] sm:$0xff] }
 0x181   :  { %v663_v46 = vadd.f32 %v661_v25, %v651_v45  ;;  %v664_v6 = vadd.f32 %v662_v35, %v652_v63  ;;  %v1524_v25 = vmov 58   ;;  %v1525_v35 = vmov 60  }
 0x183   :  { %v665_v54 = vmax.f32 %v663_v46, 0.0  ;;  %v666_v52 = vmax.f32 %v664_v6, 0.0  ;;  %v1526_v6 = vmov 64  }
 0x185   :  { %v2502_v51 = vadd.f32 %v1454_v5, %v665_v54  ;;  %v2507_v62 = vadd.f32 %v1455_v26, %v666_v52  ;;  %v3279_v54 = vld [vmem:[#allocation10_spill] sm:$0xff]  ;;  %v3280_v5 = vld [vmem:[#allocation11_spill] sm:$0xff] }
 0x187   :  { %v676_v49 = vrot.slane %v2507_v62, %v3268_v13  ;;  %v684_v55 = vrot.slane %v2507_v62, %v3269_v17  ;;  %v672_v43 = vrot.slane %v2502_v51, %v3268_v13  ;;  %v680_v48 = vrot.slane %v2502_v51, %v3269_v17 }
 0x188   :  { %v824_v44 = vrot.slane %v2502_v51, %v3272_v8  ;;  %v832_v4 = vrot.slane %v2502_v51, %v3273_v15  ;;  %v828_v7 = vrot.slane %v2507_v62, %v3272_v8  ;;  %v836_v0 = vrot.slane %v2507_v62, %v3273_v15 }
 0x189   :  { %v2518_v3 = vsel %vm3270_vm2, %v676_v49, %v684_v55  ;;  %v2521_v32 = vsel %vm3271_vm14, %v672_v43, %v680_v48  ;;  %v980_v28 = vrot.slane %v2507_v62, %v3276_v38  ;;  %v988_v31 = vrot.slane %v2507_v62, %v3277_v21  ;;  %vm3281_vm14 = vmmov %vm3270_vm2 }
 0x18a   :  { %689 = vrot.lane.b32.xlu0 %v2518_v3, %s1460_s15  ;;  %687 = vrot.lane.b32.xlu1 %v2521_v32, %s1460_s15  ;;  %v2577_v34 = vsel %vm3274_vm12, %v824_v44, %v832_v4  ;;  %v2587_v30 = vsel %vm3275_vm5, %v828_v7, %v836_v0  ;;  %v976_v45 = vrot.slane %v2502_v51, %v3276_v38  ;;  %v1527_v49 = vmov 67  }
 0x18b   :  { %v2625_v56 = vsel %vm3278_vm13, %v980_v28, %v988_v31  ;;  %v984_v63 = vrot.slane %v2502_v51, %v3277_v21  ;;  %v1128_v52 = vrot.slane %v2502_v51, %v3279_v54  ;;  %v1136_v26 = vrot.slane %v2502_v51, %v3280_v5 }
 0x18c   :  { %vm3282_vm12 = vcmp.lt.s32.totalorder %v1940_v23, 17  ;;  %vm3284_vm13 = vcmp.ge.s32.totalorder %v1940_v23, 16  ;;  %v1529_v7 = vmov 61   ;;  %v1140_v38 = vrot.slane %v2507_v62, %v3280_v5 }
 0x18d   :  { %v2636_v46 = vsel %vm3270_vm2, %v976_v45, %v984_v63  ;;  %v2653_v13 = vsel %vm3281_vm14, %v1128_v52, %v1136_v26  ;;  %vm3283_vm5 = vmmov %vm3282_vm12  ;;  %vm3285_vm2 = vcmp.lt.s32.totalorder %v1940_v23, 15 }
 0x18e   :  { %701 = vrot.lane.b32.xlu0 %v2521_v32, %s1461_s16  ;;  %696 = vperm.xlu1 %1416, %v2532_v33   ;;  %vm3286_vm14 = vmmov %vm3285_vm2 }
 0x192   :  { %710 = vperm.xlu0 %1417, %v2532_v33   ;;  %703 = vrot.lane.b32.xlu1 %v2518_v3, %s1461_s16 }
 0x193   :  { %1420 = vset.pattern.permute.xlu1 %v1504_v36 }
 0x196   :  { %1418 = vset.pattern.permute.xlu0 %v1505_v37  ;;  %717 = vrot.lane.b32.xlu1 %v2521_v32, %s1463_s17  ;;  %v1528_v37 = vmov 68  }
 0x197   :  { %726 = vperm.xlu0 %1418, %v2532_v33  }
 0x19a   :  { %719 = vrot.lane.b32.xlu1 %v2518_v3, %s1463_s17 }
 0x19b   :  { %1419 = vset.pattern.permute.xlu0 %v1506_v1 }
 0x19c   :  { %742 = vperm.xlu0 %1419, %v2532_v33  }
 0x19e   :  { %733 = vrot.lane.b32.xlu1 %v2521_v32, %s1464_s18 }
 0x1a0   :  { %759 = vrot.lane.b32.xlu0 %v2518_v3, %s1466_s19 }
 0x1a1   :  { %1422 = vset.pattern.permute.xlu0 %v1507_v42 }
 0x1a2   :  { %735 = vrot.lane.b32.xlu1 %v2518_v3, %s1464_s18 }
 0x1a4   :  { %773 = vrot.lane.b32.xlu0 %v2521_v32, %s1469_s20 }
 0x1a6   :  { %750 = vperm.xlu1 %1420, %v2532_v33  }
 0x1a8   :  { %782 = vperm.xlu0 %1422, %v2532_v33  }
 0x1aa   :  { %757 = vrot.lane.b32.xlu1 %v2521_v32, %s1466_s19 }
 0x1ab   :  { %1421 = vset.pattern.permute.xlu1 %v1508_v40 }
 0x1ac   :  { %1423 = vset.pattern.permute.xlu0 %v1509_v58 }
 0x1ad   :  { %798 = vperm.xlu0 %1423, %v2532_v33  }
 0x1ae   :  { %766 = vperm.xlu1 %1421, %v2532_v33  }
 0x1b1   :  { %1424 = vset.pattern.permute.xlu0 %v1510_v19 }
 0x1b2   :  { %814 = vperm.xlu0 %1424, %v2532_v33   ;;  %775 = vrot.lane.b32.xlu1 %v2518_v3, %s1469_s20 }
 0x1b3   :  { %1429 = vset.pattern.permute.xlu1 %v1511_v29 }
 0x1b6   :  { %1425 = vset.pattern.permute.xlu0 %v1512_v10  ;;  %789 = vrot.lane.b32.xlu1 %v2521_v32, %s1471_s21 }
 0x1b7   :  { %848 = vperm.xlu0 %1425, %v2532_v33  }
 0x1ba   :  { %791 = vrot.lane.b32.xlu1 %v2518_v3, %s1471_s21 }
 0x1bb   :  { %1426 = vset.pattern.permute.xlu0 %v1513_v14 }
 0x1bc   :  { %862 = vperm.xlu0 %1426, %v2532_v33  }
 0x1be   :  { %805 = vrot.lane.b32.xlu1 %v2521_v32, %s1473_s22 }
 0x1c0   :  { %1427 = vset.pattern.permute.xlu0 %v1514_v12 }
 0x1c1   :  { %878 = vperm.xlu0 %1427, %v2532_v33  }
 0x1c2   :  { %807 = vrot.lane.b32.xlu1 %v2518_v3, %s1473_s22 }
 0x1c5   :  { %1428 = vset.pattern.permute.xlu0 %v1515_v24 }
 0x1c6   :  { %894 = vperm.xlu0 %1428, %v2532_v33   ;;  %839 = vrot.lane.b32.xlu1 %v2577_v34, %s1460_s15 }
 0x1ca   :  { %911 = vrot.lane.b32.xlu0 %v2587_v30, %s1466_s19  ;;  %841 = vrot.lane.b32.xlu1 %v2587_v30, %s1460_s15 }
 0x1cb   :  { %1431 = vset.pattern.permute.xlu0 %v1516_v20 }
 0x1ce   :  { %925 = vrot.lane.b32.xlu0 %v2577_v34, %s1469_s20  ;;  %853 = vrot.lane.b32.xlu1 %v2577_v34, %s1461_s16 }
 0x1d2   :  { %934 = vperm.xlu0 %1431, %v2532_v33   ;;  %855 = vrot.lane.b32.xlu1 %v2587_v30, %s1461_s16 }
 0x1d6   :  { %1432 = vset.pattern.permute.xlu0 %v1517_v61  ;;  %869 = vrot.lane.b32.xlu1 %v2577_v34, %s1463_s17 }
 0x1d7   :  { %950 = vperm.xlu0 %1432, %v2532_v33  }
 0x1da   :  { %871 = vrot.lane.b32.xlu1 %v2587_v30, %s1463_s17 }
 0x1db   :  { %1433 = vset.pattern.permute.xlu0 %v1518_v27 }
 0x1dc   :  { %966 = vperm.xlu0 %1433, %v2532_v33  }
 0x1de   :  { %885 = vrot.lane.b32.xlu1 %v2577_v34, %s1464_s18 }
 0x1e0   :  { %1434 = vset.pattern.permute.xlu0 %v1519_v59 }
 0x1e1   :  { %1000 = vperm.xlu0 %1434, %v2532_v33  }
 0x1e2   :  { %887 = vrot.lane.b32.xlu1 %v2587_v30, %s1464_s18 }
 0x1e5   :  { %1435 = vset.pattern.permute.xlu0 %v1520_v53 }
 0x1e6   :  { %1014 = vperm.xlu0 %1435, %v2532_v33   ;;  %902 = vperm.xlu1 %1429, %v2532_v33  }
 0x1ea   :  { %1436 = vset.pattern.permute.xlu0 %v1521_v39  ;;  %909 = vrot.lane.b32.xlu1 %v2577_v34, %s1466_s19  ;;  %v1530_v39 = vmov 70  }
 0x1eb   :  { %1030 = vperm.xlu0 %1436, %v2532_v33   ;;  %1430 = vset.pattern.permute.xlu1 %v1522_v41 }
 0x1ee   :  { %918 = vperm.xlu1 %1430, %v2532_v33  }
 0x1ef   :  { %1437 = vset.pattern.permute.xlu0 %v1523_v47  ;;  %v1132_v47 = vrot.slane %v2507_v62, %v3279_v54  ;;  %v1531_v54 = vmov 73  }
 0x1f0   :  { %1046 = vperm.xlu0 %1437, %v2532_v33  }
 0x1f2   :  { %927 = vrot.lane.b32.xlu1 %v2587_v30, %s1469_s20 }
 0x1f3   :  { %1438 = vset.pattern.permute.xlu1 %v1524_v25 }
 0x1f4   :  { %1063 = vrot.lane.b32.xlu0 %v2625_v56, %s1466_s19 }
 0x1f5   :  { %1440 = vset.pattern.permute.xlu0 %v1525_v35 }
 0x1f6   :  { %941 = vrot.lane.b32.xlu1 %v2577_v34, %s1471_s21 }
 0x1f8   :  { %1077 = vrot.lane.b32.xlu0 %v2636_v46, %s1469_s20 }
 0x1fa   :  { %943 = vrot.lane.b32.xlu1 %v2587_v30, %s1471_s21 }
 0x1fc   :  { %1086 = vperm.xlu0 %1440, %v2532_v33   ;;  %v690_v17 = vpop.permute.xlu0 %689  ;;  %v688_v55 = vpop.permute.xlu1 %687 }
 0x1fd   :  { %v691_v48 = vsel %vm3282_vm12, %v688_v55, %v690_v17  ;;  %v692_v36 = vsel %vm3283_vm5, %v690_v17, %v688_v55  ;;  %vm3287_vm12 = vcmask 1043456   ;;  %vm3288_vm5 = vcmp.lt.s32.totalorder %v1940_v23, 1 }
 0x1fe   :  { %957 = vrot.lane.b32.xlu1 %v2577_v34, %s1473_s22  ;;  %v694_v40 = vsel %vm1983_vm7, %v691_v48, 0.0  ;;  %v693_v29 = vsel %vm1991_vm8, %v692_v36, 0.0  ;;  %v2704_v35 = vsel %vm3287_vm12, %v1132_v47, %v1140_v38  ;;  %vm3292_vm12 = vcmp.lt.s32.totalorder %v1940_v23, 113 }
 0x200   :  { %1442 = vset.pattern.permute.xlu0 %v1526_v6  ;;  %v702_v51 = vpop.permute.xlu0 %701 }
 0x201   :  { %1166 = vperm.xlu0 %1442, %v2532_v33  }
 0x202   :  { %959 = vrot.lane.b32.xlu1 %v2587_v30, %s1473_s22 }
 0x205   :  { %1143 = vrot.lane.b32.xlu0 %v2653_v13, %s1460_s15 }
 0x206   :  { %991 = vrot.lane.b32.xlu1 %v2636_v46, %s1460_s15  ;;  %1445 = vset.pattern.permute.xlu0 %v1527_v49 }
 0x209   :  { %1157 = vrot.lane.b32.xlu0 %v2653_v13, %s1461_s16 }
 0x20a   :  { %993 = vrot.lane.b32.xlu1 %v2625_v56, %s1460_s15 }
 0x20d   :  { %1206 = vperm.xlu0 %1445, %v2532_v33   ;;  %v697_v43 = vpop.permute.xlu1 %696 }
 0x20e   :  { %1005 = vrot.lane.b32.xlu1 %v2636_v46, %s1461_s16  ;;  %v700_v10 = vmul.f32 %v697_v43, %v694_v40  ;;  %v699_v8 = vmul.f32 %v697_v43, %v693_v29 }
 0x211   :  { %1446 = vset.pattern.permute.xlu0 %v1528_v37  ;;  %v704_v1 = vpop.permute.xlu1 %703  ;;  %v711_v42 = vpop.permute.xlu0 %710 }
 0x212   :  { %v706_v58 = vsel %vm74_vm1, %v704_v1, %v702_v51  ;;  %1222 = vperm.xlu0 %1446, %v2532_v33   ;;  %v705_v19 = vsel %vm74_vm1, %v702_v51, %v704_v1  ;;  %1007 = vrot.lane.b32.xlu1 %v2625_v56, %s1461_s16 }
 0x213   :  { %v707_v14 = vsel %vm3284_vm13, %v706_v58, 0.0  ;;  %v714_v12 = vmul.f32 %v711_v42, %v705_v19  ;;  %vm3289_vm13 = vmmov %vm3288_vm5  ;;  %v1532_v19 = vmov 59  }
 0x214   :  { %v713_v44 = vmul.f32 %v711_v42, %v707_v14 }
 0x215   :  { %v716_v15 = vadd.f32 %v714_v12, %v700_v10  ;;  %v718_v4 = vpop.permute.xlu1 %717 }
 0x216   :  { %v715_v24 = vadd.f32 %v713_v44, %v699_v8  ;;  %1447 = vset.pattern.permute.xlu0 %v1529_v7  ;;  %1021 = vrot.lane.b32.xlu1 %v2636_v46, %s1463_s17  ;;  %v727_v0 = vpop.permute.xlu0 %726 }
 0x217   :  { %1102 = vperm.xlu0 %1447, %v2532_v33  }
 0x219   :  { %v720_v20 = vpop.permute.xlu1 %719 }
 0x21a   :  { %v721_v61 = vsel %vm3285_vm2, %v718_v4, %v720_v20  ;;  %v722_v27 = vsel %vm3286_vm14, %v720_v20, %v718_v4  ;;  %1023 = vrot.lane.b32.xlu1 %v2625_v56, %s1463_s17  ;;  %vm3290_vm2 = vcmp.lt.s32.totalorder %v1940_v23, 127 }
 0x21b   :  { %v723_v59 = vsel %vm2022_vm11, %v722_v27, 0.0  ;;  %v724_v53 = vsel %vm2014_vm10, %v721_v61, 0.0  ;;  %1450 = vset.pattern.permute.xlu0 %v1530_v39  ;;  %v743_v41 = vpop.permute.xlu0 %742  ;;  %vm3291_vm14 = vmmov %vm3290_vm2 }
 0x21c   :  { %v729_v28 = vmul.f32 %v727_v0, %v723_v59  ;;  %v730_v21 = vmul.f32 %v727_v0, %v724_v53  ;;  %1254 = vperm.xlu0 %1450, %v2532_v33   ;;  %v1533_v59 = vmov 63  }
 0x21d   :  { %v734_v31 = vpop.permute.xlu1 %733 }
 0x21e   :  { %v731_v45 = vadd.f32 %v729_v28, %v715_v24  ;;  %v732_v63 = vadd.f32 %v730_v21, %v716_v15  ;;  %1037 = vrot.lane.b32.xlu1 %v2636_v46, %s1464_s18 }
 0x21f   :  { %v760_v25 = vpop.permute.xlu0 %759 }
 0x220   :  { %1215 = vrot.lane.b32.xlu0 %v2704_v35, %s1466_s19 }
 0x221   :  { %v736_v6 = vpop.permute.xlu1 %735  ;;  %1453 = vset.pattern.permute.xlu0 %v1531_v54 }
 0x222   :  { %v737_v62 = vsel %vm3288_vm5, %v734_v31, %v736_v6  ;;  %v738_v52 = vsel %vm3289_vm13, %v736_v6, %v734_v31  ;;  %1039 = vrot.lane.b32.xlu1 %v2625_v56, %s1464_s18  ;;  %vm3293_vm5 = vmmov %vm3292_vm12  ;;  %vm3294_vm13 = vcmp.lt.s32.totalorder %v1947_v18, 240 }
 0x223   :  { %v739_v5 = vsel %vm1957_vm3, %v738_v52, 0.0  ;;  %v740_v26 = vsel %vm1983_vm7, %v737_v62, 0.0  ;;  %v774_v49 = vpop.permute.xlu0 %773 }
 0x224   :  { %v745_v17 = vmul.f32 %v743_v41, %v739_v5  ;;  %v746_v55 = vmul.f32 %v743_v41, %v740_v26  ;;  %1095 = vrot.lane.b32.xlu0 %v2625_v56, %s1471_s21  ;;  %v1534_v26 = vmov 65  }
 0x225   :  { %v751_v51 = vpop.permute.xlu1 %750 }
 0x226   :  { %v747_v43 = vadd.f32 %v745_v17, %v731_v45  ;;  %v748_v48 = vadd.f32 %v746_v55, %v732_v63  ;;  %1054 = vperm.xlu1 %1438, %v2532_v33   ;;  %v753_v1 = vmul.f32 %v751_v51, %v2521_v32  ;;  %v754_v42 = vmul.f32 %v751_v51, %v2518_v3 }
 0x227   :  { %v783_v36 = vpop.permute.xlu0 %782 }
 0x228   :  { %1231 = vrot.lane.b32.xlu0 %v2704_v35, %s1469_s20  ;;  %v755_v14 = vadd.f32 %v753_v1, %v747_v43  ;;  %v756_v12 = vadd.f32 %v754_v42, %v748_v48 }
 0x229   :  { %v758_v37 = vpop.permute.xlu1 %757 }
 0x22a   :  { %v761_v40 = vsel %vm3290_vm2, %v758_v37, %v760_v25  ;;  %v762_v58 = vsel %vm3291_vm14, %v760_v25, %v758_v37  ;;  %1061 = vrot.lane.b32.xlu1 %v2636_v46, %s1466_s19  ;;  %v1535_v37 = vmov 66   ;;  %vm3295_vm2 = vcmp.lt.s32.totalorder %v1940_v23, 17 }
 0x22b   :  { %1439 = vset.pattern.permute.xlu1 %v1532_v19  ;;  %v763_v32 = vsel %vm1971_vm6, %v761_v40, 0.0  ;;  %v764_v3 = vsel %vm2014_vm10, %v762_v58, 0.0  ;;  %vm3296_vm14 = vmmov %vm3295_vm2 }
 0x22c   :  { %1111 = vrot.lane.b32.xlu0 %v2625_v56, %s1473_s22  ;;  %v799_v29 = vpop.permute.xlu0 %798 }
 0x22d   :  { %v767_v10 = vpop.permute.xlu1 %766 }
 0x22e   :  { %v769_v8 = vmul.f32 %v767_v10, %v763_v32  ;;  %v770_v44 = vmul.f32 %v767_v10, %v764_v3  ;;  %1070 = vperm.xlu1 %1439, %v2532_v33   ;;  %v1536_v10 = vmov 69  }
 0x230   :  { %v771_v15 = vadd.f32 %v769_v8, %v755_v14  ;;  %v772_v4 = vadd.f32 %v770_v44, %v756_v12  ;;  %1247 = vrot.lane.b32.xlu0 %v2704_v35, %s1471_s21 }
 0x231   :  { %v776_v24 = vpop.permute.xlu1 %775  ;;  %v815_v7 = vpop.permute.xlu0 %814 }
 0x232   :  { %v777_v0 = vsel %vm3292_vm12, %v774_v49, %v776_v24  ;;  %v778_v20 = vsel %vm3293_vm5, %v776_v24, %v774_v49  ;;  %1079 = vrot.lane.b32.xlu1 %v2625_v56, %s1469_s20  ;;  %vm3297_vm12 = vcmp.ge.s32.totalorder %v1940_v23, 16  ;;  %vm3298_vm5 = vcmp.lt.s32.totalorder %v1940_v23, 15 }
 0x233   :  { %v779_v61 = vsel %vm1957_vm3, %v777_v0, 0.0  ;;  %v780_v27 = vsel %vm2136_vm4, %v778_v20, 0.0  ;;  %1441 = vset.pattern.permute.xlu1 %v1533_v59 }
 0x234   :  { %v785_v53 = vmul.f32 %v783_v36, %v779_v61  ;;  %v786_v39 = vmul.f32 %v783_v36, %v780_v27  ;;  %1263 = vrot.lane.b32.xlu0 %v2704_v35, %s1473_s22 }
 0x235   :  { %v790_v41 = vpop.permute.xlu1 %789 }
 0x236   :  { %v787_v47 = vadd.f32 %v785_v53, %v771_v15  ;;  %v788_v38 = vadd.f32 %v786_v39, %v772_v4  ;;  %1093 = vrot.lane.b32.xlu1 %v2636_v46, %s1471_s21  ;;  %v849_v28 = vpop.permute.xlu0 %848 }
 0x239   :  { %v792_v21 = vpop.permute.xlu1 %791 }
 0x23a   :  { %v793_v31 = vsel %vm167_vm15, %v790_v41, %v792_v21  ;;  %v794_v45 = vsel %vm167_vm15, %v792_v21, %v790_v41  ;;  %1152 = vperm.xlu1 %1441, %v2532_v33  }
 0x23b   :  { %v796_v63 = vsel %vm3294_vm13, %v794_v45, 0.0  ;;  %v801_v25 = vmul.f32 %v799_v29, %v793_v31  ;;  %v863_v6 = vpop.permute.xlu0 %862  ;;  %vm3299_vm13 = vmmov %vm3298_vm5 }
 0x23c   :  { %v802_v62 = vmul.f32 %v799_v29, %v796_v63 }
 0x23d   :  { %v806_v52 = vpop.permute.xlu1 %805  ;;  %v803_v5 = vadd.f32 %v801_v25, %v787_v47 }
 0x23e   :  { %1443 = vset.pattern.permute.xlu1 %v1534_v26  ;;  %v804_v49 = vadd.f32 %v802_v62, %v788_v38 }
 0x23f   :  { %1182 = vperm.xlu1 %1443, %v2532_v33  }
 0x240   :  { %v879_v17 = vpop.permute.xlu0 %878 }
 0x241   :  { %v808_v55 = vpop.permute.xlu1 %807 }
 0x242   :  { %v809_v51 = vsel %vm184_vm0, %v806_v52, %v808_v55  ;;  %v810_v43 = vsel %vm184_vm0, %v808_v55, %v806_v52 }
 0x243   :  { %v811_v48 = vsel %vm1971_vm6, %v809_v51, 0.0  ;;  %v812_v36 = vsel %vm2202_vm9, %v810_v43, 0.0  ;;  %1444 = vset.pattern.permute.xlu1 %v1535_v37 }
 0x244   :  { %v817_v1 = vmul.f32 %v815_v7, %v811_v48  ;;  %v818_v42 = vmul.f32 %v815_v7, %v812_v36  ;;  %1198 = vperm.xlu1 %1444, %v2532_v33  }
 0x245   :  { %v895_v40 = vpop.permute.xlu0 %894  ;;  %v840_v58 = vpop.permute.xlu1 %839 }
 0x246   :  { %v2772_v19 = vadd.f32 %v817_v1, %v803_v5  ;;  %v2774_v29 = vadd.f32 %v818_v42, %v804_v49  ;;  %v1537_v42 = vmov 62  }
 0x248   :  { %1145 = vrot.lane.b32.xlu1 %v2704_v35, %s1460_s15 }
 0x249   :  { %v2778_v32 = vpop.permute.xlu0 %911  ;;  %v842_v3 = vpop.permute.xlu1 %841  ;;  %1448 = vset.pattern.permute.xlu1 %v1536_v10 }
 0x24a   :  { %v843_v14 = vsel %vm3295_vm2, %v840_v58, %v842_v3  ;;  %v844_v12 = vsel %vm3296_vm14, %v842_v3, %v840_v58  ;;  %vm3300_vm2 = vcmp.lt.s32.totalorder %v1940_v23, 1 }
 0x24b   :  { %v845_v8 = vsel %vm1991_vm8, %v844_v12, 0.0  ;;  %v846_v44 = vsel %vm1983_vm7, %v843_v14, 0.0  ;;  %vm3301_vm14 = vmmov %vm3300_vm2 }
 0x24c   :  { %v851_v15 = vmul.f32 %v849_v28, %v845_v8  ;;  %v852_v4 = vmul.f32 %v849_v28, %v846_v44  ;;  %1159 = vrot.lane.b32.xlu1 %v2704_v35, %s1461_s16 }
 0x24d   :  { %v2790_v24 = vpop.permute.xlu0 %925  ;;  %v854_v7 = vpop.permute.xlu1 %853 }
 0x250   :  { %1173 = vrot.lane.b32.xlu1 %v2653_v13, %s1463_s17 }
 0x251   :  { %v856_v0 = vpop.permute.xlu1 %855  ;;  %v2794_v20 = vpop.permute.xlu0 %934 }
 0x252   :  { %v857_v61 = vsel %vm74_vm1, %v854_v7, %v856_v0  ;;  %v858_v27 = vsel %vm74_vm1, %v856_v0, %v854_v7 }
 0x253   :  { %v859_v59 = vsel %vm3297_vm12, %v858_v27, 0.0  ;;  %v866_v53 = vmul.f32 %v863_v6, %v857_v61  ;;  %vm3302_vm12 = vcmp.lt.s32.totalorder %v1940_v23, 127 }
 0x254   :  { %v865_v39 = vmul.f32 %v863_v6, %v859_v59  ;;  %1175 = vrot.lane.b32.xlu1 %v2704_v35, %s1463_s17 }
 0x255   :  { %v868_v41 = vadd.f32 %v866_v53, %v852_v4  ;;  %v870_v47 = vpop.permute.xlu1 %869  ;;  %v1538_v53 = vmov 71  }
 0x256   :  { %v867_v38 = vadd.f32 %v865_v39, %v851_v15  ;;  %v2804_v28 = vpop.permute.xlu0 %950 }
 0x258   :  { %1189 = vrot.lane.b32.xlu1 %v2653_v13, %s1464_s18 }
 0x259   :  { %v872_v21 = vpop.permute.xlu1 %871 }
 0x25a   :  { %v873_v31 = vsel %vm3298_vm5, %v870_v47, %v872_v21  ;;  %v874_v45 = vsel %vm3299_vm13, %v872_v21, %v870_v47  ;;  %vm3303_vm5 = vmmov %vm3302_vm12  ;;  %vm3304_vm13 = vcmp.lt.s32.totalorder %v1940_v23, 113 }
 0x25b   :  { %v875_v63 = vsel %vm2022_vm11, %v874_v45, 0.0  ;;  %v876_v25 = vsel %vm2014_vm10, %v873_v31, 0.0  ;;  %v2816_v6 = vpop.permute.xlu0 %966 }
 0x25c   :  { %v881_v62 = vmul.f32 %v879_v17, %v875_v63  ;;  %v882_v52 = vmul.f32 %v879_v17, %v876_v25  ;;  %1191 = vrot.lane.b32.xlu1 %v2704_v35, %s1464_s18 }
 0x25d   :  { %v886_v5 = vpop.permute.xlu1 %885 }
 0x25e   :  { %v883_v26 = vadd.f32 %v881_v62, %v867_v38  ;;  %v884_v49 = vadd.f32 %v882_v52, %v868_v41 }
 0x260   :  { %1238 = vperm.xlu1 %1448, %v2532_v33   ;;  %v2821_v55 = vpop.permute.xlu0 %1000 }
 0x261   :  { %v888_v51 = vpop.permute.xlu1 %887 }
 0x262   :  { %v889_v43 = vsel %vm3300_vm2, %v886_v5, %v888_v51  ;;  %v890_v48 = vsel %vm3301_vm14, %v888_v51, %v886_v5  ;;  %vm3305_vm2 = vmmov %vm3304_vm13  ;;  %vm3306_vm14 = vcmp.lt.s32.totalorder %v1947_v18, 240 }
 0x263   :  { %v891_v17 = vsel %vm1957_vm3, %v890_v48, 0.0  ;;  %v892_v36 = vsel %vm1983_vm7, %v889_v43, 0.0 }
 0x264   :  { %v897_v37 = vmul.f32 %v895_v40, %v891_v17  ;;  %v898_v1 = vmul.f32 %v895_v40, %v892_v36  ;;  %1449 = vset.pattern.permute.xlu1 %v1537_v42 }
 0x265   :  { %1118 = vperm.xlu1 %1449, %v2532_v33   ;;  %v903_v58 = vpop.permute.xlu1 %902  ;;  %v2832_v3 = vpop.permute.xlu0 %1014 }
 0x266   :  { %v899_v10 = vadd.f32 %v897_v37, %v883_v26  ;;  %v900_v14 = vadd.f32 %v898_v1, %v884_v49  ;;  %v905_v12 = vmul.f32 %v903_v58, %v2577_v34  ;;  %v906_v8 = vmul.f32 %v903_v58, %v2587_v30 }
 0x268   :  { %v907_v44 = vadd.f32 %v905_v12, %v899_v10  ;;  %v908_v15 = vadd.f32 %v906_v8, %v900_v14 }
 0x269   :  { %1451 = vset.pattern.permute.xlu1 %v1531_v54  ;;  %v910_v4 = vpop.permute.xlu1 %909 }
 0x26a   :  { %v913_v40 = vsel %vm3302_vm12, %v910_v4, %v2778_v32  ;;  %v914_v7 = vsel %vm3303_vm5, %v2778_v32, %v910_v4  ;;  %1278 = vperm.xlu1 %1451, %v2532_v33   ;;  %v2844_v0 = vpop.permute.xlu0 %1030  ;;  %vm3307_vm12 = vcmp.lt.s32.totalorder %v1940_v23, 17 }
 0x26b   :  { %v915_v34 = vsel %vm1971_vm6, %v913_v40, 0.0  ;;  %v916_v30 = vsel %vm2014_vm10, %v914_v7, 0.0  ;;  %vm3308_vm5 = vmmov %vm3307_vm12 }
 0x26d   :  { %v919_v54 = vpop.permute.xlu1 %918 }
 0x26e   :  { %v921_v61 = vmul.f32 %v919_v54, %v915_v34  ;;  %v922_v27 = vmul.f32 %v919_v54, %v916_v30  ;;  %1213 = vrot.lane.b32.xlu1 %v2653_v13, %s1466_s19 }
 0x26f   :  { %v2852_v59 = vpop.permute.xlu0 %1046  ;;  %1452 = vset.pattern.permute.xlu1 %v1538_v53 }
 0x270   :  { %v923_v32 = vadd.f32 %v921_v61, %v907_v44  ;;  %v924_v39 = vadd.f32 %v922_v27, %v908_v15 }
 0x271   :  { %v928_v41 = vpop.permute.xlu1 %927 }
 0x272   :  { %v929_v47 = vsel %vm3304_vm13, %v2790_v24, %v928_v41  ;;  %v930_v38 = vsel %vm3305_vm2, %v928_v41, %v2790_v24  ;;  %1270 = vperm.xlu1 %1452, %v2532_v33   ;;  %vm3309_vm13 = vcmp.ge.s32.totalorder %v1940_v23, 16  ;;  %vm3310_vm2 = vcmp.lt.s32.totalorder %v1940_v23, 15 }
 0x273   :  { %v931_v21 = vsel %vm1957_vm3, %v929_v47, 0.0  ;;  %v932_v31 = vsel %vm2136_vm4, %v930_v38, 0.0  ;;  %v2867_v25 = vpop.permute.xlu0 %1063 }
 0x274   :  { %v937_v45 = vmul.f32 %v2794_v20, %v931_v21  ;;  %v938_v63 = vmul.f32 %v2794_v20, %v932_v31 }
 0x275   :  { %v942_v62 = vpop.permute.xlu1 %941 }
 0x276   :  { %v939_v52 = vadd.f32 %v937_v45, %v923_v32  ;;  %v940_v5 = vadd.f32 %v938_v63, %v924_v39  ;;  %1229 = vrot.lane.b32.xlu1 %v2653_v13, %s1469_s20 }
 0x277   :  { %v2877_v49 = vpop.permute.xlu0 %1077 }
 0x279   :  { %v944_v24 = vpop.permute.xlu1 %943 }
 0x27a   :  { %v945_v33 = vsel %vm167_vm15, %v942_v62, %v944_v24  ;;  %v946_v26 = vsel %vm167_vm15, %v944_v24, %v942_v62  ;;  %1109 = vrot.lane.b32.xlu1 %v2636_v46, %s1473_s22 }
 0x27b   :  { %v948_v20 = vsel %vm3306_vm14, %v946_v26, 0.0  ;;  %v953_v51 = vmul.f32 %v2804_v28, %v945_v33  ;;  %v2885_v37 = vpop.permute.xlu0 %1086  ;;  %vm3311_vm14 = vmmov %vm3310_vm2 }
 0x27c   :  { %v954_v43 = vmul.f32 %v2804_v28, %v948_v20 }
 0x27d   :  { %v955_v48 = vadd.f32 %v953_v51, %v939_v52  ;;  %v958_v17 = vpop.permute.xlu1 %957 }
 0x27e   :  { %v956_v36 = vadd.f32 %v954_v43, %v940_v5  ;;  %1245 = vrot.lane.b32.xlu1 %v2653_v13, %s1471_s21 }
 0x280   :  { %v2903_v4 = vpop.permute.xlu0 %1166 }
 0x281   :  { %v960_v1 = vpop.permute.xlu1 %959 }
 0x282   :  { %v961_v42 = vsel %vm184_vm0, %v958_v17, %v960_v1  ;;  %v962_v58 = vsel %vm184_vm0, %v960_v1, %v958_v17  ;;  %1261 = vrot.lane.b32.xlu1 %v2653_v13, %s1473_s22 }
 0x283   :  { %v963_v28 = vsel %vm1971_vm6, %v961_v42, 0.0  ;;  %v964_v10 = vsel %vm2202_vm9, %v962_v58, 0.0 }
 0x284   :  { %v969_v14 = vmul.f32 %v2816_v6, %v963_v28  ;;  %v970_v12 = vmul.f32 %v2816_v6, %v964_v10  ;;  %v2909_v30 = vpop.permute.xlu0 %1143 }
 0x285   :  { %v992_v8 = vpop.permute.xlu1 %991 }
 0x286   :  { %v2899_v44 = vadd.f32 %v969_v14, %v955_v48  ;;  %v2901_v15 = vadd.f32 %v970_v12, %v956_v36 }
 0x288   :  { %v2919_v39 = vpop.permute.xlu0 %1157 }
 0x289   :  { %v994_v40 = vpop.permute.xlu1 %993 }
 0x28a   :  { %v995_v7 = vsel %vm3307_vm12, %v992_v8, %v994_v40  ;;  %v996_v34 = vsel %vm3308_vm5, %v994_v40, %v992_v8  ;;  %vm3312_vm12 = vcmp.lt.s32.totalorder %v1940_v23, 1 }
 0x28b   :  { %v998_v6 = vsel %vm1983_vm7, %v995_v7, 0.0  ;;  %v997_v61 = vsel %vm1991_vm8, %v996_v34, 0.0  ;;  %vm3313_vm5 = vmmov %vm3312_vm12 }
 0x28c   :  { %v1004_v41 = vmul.f32 %v2821_v55, %v998_v6  ;;  %v1003_v21 = vmul.f32 %v2821_v55, %v997_v61  ;;  %v2927_v52 = vpop.permute.xlu0 %1206 }
 0x28d   :  { %v1006_v54 = vpop.permute.xlu1 %1005 }
 0x291   :  { %v1008_v27 = vpop.permute.xlu1 %1007  ;;  %v2939_v51 = vpop.permute.xlu0 %1222 }
 0x292   :  { %v1009_v53 = vsel %vm74_vm1, %v1006_v54, %v1008_v27  ;;  %v1010_v32 = vsel %vm74_vm1, %v1008_v27, %v1006_v54 }
 0x293   :  { %v1011_v47 = vsel %vm3309_vm13, %v1010_v32, 0.0  ;;  %v1018_v38 = vmul.f32 %v2832_v3, %v1009_v53  ;;  %vm3314_vm13 = vcmp.lt.s32.totalorder %v1940_v23, 127 }
 0x294   :  { %v1017_v31 = vmul.f32 %v2832_v3, %v1011_v47 }
 0x295   :  { %v1020_v45 = vadd.f32 %v1018_v38, %v1004_v41  ;;  %v1022_v63 = vpop.permute.xlu1 %1021 }
 0x296   :  { %v1019_v62 = vadd.f32 %v1017_v31, %v1003_v21  ;;  %v1103_v58 = vpop.permute.xlu0 %1102 }
 0x299   :  { %v1024_v5 = vpop.permute.xlu1 %1023 }
 0x29a   :  { %v1025_v24 = vsel %vm3310_vm2, %v1022_v63, %v1024_v5  ;;  %v1026_v33 = vsel %vm3311_vm14, %v1024_v5, %v1022_v63  ;;  %vm3315_vm2 = vmmov %vm3314_vm13  ;;  %vm3316_vm14 = vcmp.lt.s32.totalorder %v1940_v23, 113 }
 0x29b   :  { %v1027_v26 = vsel %vm2022_vm11, %v1026_v33, 0.0  ;;  %v1028_v55 = vsel %vm2014_vm10, %v1025_v24, 0.0  ;;  %v2953_v61 = vpop.permute.xlu0 %1254 }
 0x29c   :  { %v1033_v3 = vmul.f32 %v2844_v0, %v1027_v26  ;;  %v1034_v20 = vmul.f32 %v2844_v0, %v1028_v55 }
 0x29d   :  { %v1038_v43 = vpop.permute.xlu1 %1037 }
 0x29e   :  { %v1035_v48 = vadd.f32 %v1033_v3, %v1019_v62  ;;  %v1036_v17 = vadd.f32 %v1034_v20, %v1020_v45 }
 0x29f   :  { %v2965_v38 = vpop.permute.xlu0 %1215 }
 0x2a1   :  { %v1040_v36 = vpop.permute.xlu1 %1039 }
 0x2a2   :  { %v1041_v1 = vsel %vm3312_vm12, %v1038_v43, %v1040_v36  ;;  %v1042_v42 = vsel %vm3313_vm5, %v1040_v36, %v1038_v43  ;;  %vm3317_vm12 = vmmov %vm3316_vm14  ;;  %vm3318_vm5 = vcmp.lt.s32.totalorder %v1947_v18, 240 }
 0x2a3   :  { %v1043_v28 = vsel %vm1957_vm3, %v1042_v42, 0.0  ;;  %v1044_v10 = vsel %vm1983_vm7, %v1041_v1, 0.0  ;;  %v1096_v26 = vpop.permute.xlu0 %1095 }
 0x2a4   :  { %v1049_v0 = vmul.f32 %v2852_v59, %v1043_v28  ;;  %v1050_v14 = vmul.f32 %v2852_v59, %v1044_v10 }
 0x2a5   :  { %v1055_v12 = vpop.permute.xlu1 %1054 }
 0x2a6   :  { %v1051_v8 = vadd.f32 %v1049_v0, %v1035_v48  ;;  %v1052_v40 = vadd.f32 %v1050_v14, %v1036_v17  ;;  %v1057_v7 = vmul.f32 %v1055_v12, %v2636_v46  ;;  %v1058_v34 = vmul.f32 %v1055_v12, %v2625_v56 }
 0x2a8   :  { %v1059_v54 = vadd.f32 %v1057_v7, %v1051_v8  ;;  %v1060_v6 = vadd.f32 %v1058_v34, %v1052_v40 }
 0x2a9   :  { %v1062_v27 = vpop.permute.xlu1 %1061 }
 0x2aa   :  { %v1065_v53 = vsel %vm3314_vm13, %v1062_v27, %v2867_v25  ;;  %v1066_v59 = vsel %vm3315_vm2, %v2867_v25, %v1062_v27  ;;  %vm3319_vm13 = vcmp.lt.s32.totalorder %v1940_v23, 17 }
 0x2ab   :  { %v1067_v32 = vsel %vm1971_vm6, %v1065_v53, 0.0  ;;  %v1068_v46 = vsel %vm2014_vm10, %v1066_v59, 0.0  ;;  %vm3320_vm2 = vmmov %vm3319_vm13 }
 0x2ad   :  { %v1071_v56 = vpop.permute.xlu1 %1070 }
 0x2ae   :  { %v1073_v41 = vmul.f32 %v1071_v56, %v1067_v32  ;;  %v1074_v47 = vmul.f32 %v1071_v56, %v1068_v46 }
 0x2b0   :  { %v1075_v21 = vadd.f32 %v1073_v41, %v1059_v54  ;;  %v1076_v31 = vadd.f32 %v1074_v47, %v1060_v6 }
 0x2b1   :  { %v1080_v45 = vpop.permute.xlu1 %1079 }
 0x2b2   :  { %v1081_v63 = vsel %vm3316_vm14, %v2877_v49, %v1080_v45  ;;  %v1082_v25 = vsel %vm3317_vm12, %v1080_v45, %v2877_v49  ;;  %vm3321_vm14 = vcmp.ge.s32.totalorder %v1940_v23, 16  ;;  %vm3322_vm12 = vcmp.lt.s32.totalorder %v1940_v23, 15 }
 0x2b3   :  { %v1083_v62 = vsel %vm1957_vm3, %v1081_v63, 0.0  ;;  %v1084_v5 = vsel %vm2136_vm4, %v1082_v25, 0.0 }
 0x2b4   :  { %v1089_v24 = vmul.f32 %v2885_v37, %v1083_v62  ;;  %v1090_v33 = vmul.f32 %v2885_v37, %v1084_v5 }
 0x2b5   :  { %v1094_v55 = vpop.permute.xlu1 %1093 }
 0x2b6   :  { %v1091_v3 = vadd.f32 %v1089_v24, %v1075_v21  ;;  %v1092_v20 = vadd.f32 %v1090_v33, %v1076_v31  ;;  %v1097_v43 = vsel %vm167_vm15, %v1094_v55, %v1096_v26  ;;  %v1098_v49 = vsel %vm167_vm15, %v1096_v26, %v1094_v55  ;;  %v1232_v21 = vpop.permute.xlu0 %1231 }
 0x2b7   :  { %v1100_v48 = vsel %vm3318_vm5, %v1098_v49, 0.0  ;;  %v1105_v17 = vmul.f32 %v1103_v58, %v1097_v43  ;;  %vm3323_vm5 = vmmov %vm3322_vm12 }
 0x2b8   :  { %v1106_v36 = vmul.f32 %v1103_v58, %v1100_v48 }
 0x2b9   :  { %v2985_v1 = vadd.f32 %v1105_v17, %v1091_v3  ;;  %v1153_v42 = vpop.permute.xlu1 %1152 }
 0x2ba   :  { %v2987_v28 = vadd.f32 %v1106_v36, %v1092_v20  ;;  %v1112_v43 = vpop.permute.xlu0 %1111 }
 0x2be   :  { %v1183_v37 = vpop.permute.xlu1 %1182 }
 0x2c3   :  { %v1199_v10 = vpop.permute.xlu1 %1198 }
 0x2c7   :  { %v1146_v0 = vpop.permute.xlu1 %1145 }
 0x2c8   :  { %v1147_v59 = vsel %vm3319_vm13, %v2909_v30, %v1146_v0  ;;  %v1148_v32 = vsel %vm3320_vm2, %v1146_v0, %v2909_v30  ;;  %vm3324_vm13 = vcmp.lt.s32.totalorder %v1940_v23, 1 }
 0x2cb   :  { %v1160_v14 = vpop.permute.xlu1 %1159 }
 0x2cc   :  { %v1162_v58 = vsel %vm74_vm1, %v1160_v14, %v2919_v39 }
 0x2cf   :  { %v1174_v12 = vpop.permute.xlu1 %1173 }
 0x2d3   :  { %v1176_v8 = vpop.permute.xlu1 %1175 }
 0x2d4   :  { %v1177_v41 = vsel %vm3322_vm12, %v1174_v12, %v1176_v8  ;;  %v1178_v47 = vsel %vm3323_vm5, %v1176_v8, %v1174_v12  ;;  %v1209_v12 = vmul.f32 %v2927_v52, %v2653_v13 }
 0x2d5   :  { %v1179_v25 = vsel %vm2022_vm11, %v1178_v47, 0.0  ;;  %v1180_v9 = vsel %vm2014_vm10, %v1177_v41, 0.0 }
 0x2d6   :  { %v1185_v55 = vmul.f32 %v1183_v37, %v1179_v25  ;;  %v1186_v3 = vmul.f32 %v1183_v37, %v1180_v9 }
 0x2d7   :  { %v1190_v40 = vpop.permute.xlu1 %1189 }
 0x2db   :  { %v1192_v7 = vpop.permute.xlu1 %1191 }
 0x2df   :  { %v2989_v34 = vpop.permute.xlu1 %1238 }
 0x2e4   :  { %v1119_v54 = vpop.permute.xlu1 %1118 }
 0x2e9   :  { %v1279_v6 = vpop.permute.xlu1 %1278 }
 0x2ea   :  { %v1281_v27 = vadd.f32 %v1279_v6, %v2772_v19  ;;  %v1282_v53 = vadd.f32 %v1279_v6, %v2774_v29  ;;  %v1161_v19 = vsel %vm74_vm1, %v2919_v39, %v1160_v14  ;;  %v1163_v29 = vsel %vm3321_vm14, %v1162_v58, 0.0  ;;  %vm3325_vm1 = vmmov %vm3324_vm13 }
 0x2eb   :  { %v1193_v39 = vsel %vm3324_vm13, %v1190_v40, %v1192_v7  ;;  %v1194_v31 = vsel %vm3325_vm1, %v1192_v7, %v1190_v40  ;;  %v1169_v45 = vmul.f32 %v2903_v4, %v1163_v29  ;;  %v1170_v63 = vmul.f32 %v2903_v4, %v1161_v19 }
 0x2ec   :  { %v3003_v46 = vadd.f32 %v1281_v27, %v2899_v44  ;;  %v3006_v56 = vadd.f32 %v1282_v53, %v2901_v15  ;;  %v1149_v44 = vsel %vm1991_vm8, %v1148_v32, 0.0  ;;  %v1150_v15 = vsel %vm1983_vm7, %v1147_v59, 0.0  ;;  %v1248_v53 = vpop.permute.xlu0 %1247 }
 0x2ed   :  { %v1214_v30 = vpop.permute.xlu1 %1213  ;;  %v1155_v5 = vmul.f32 %v1153_v42, %v1149_v44  ;;  %v1156_v24 = vmul.f32 %v1153_v42, %v1150_v15  ;;  %v1195_v33 = vsel %vm1957_vm3, %v1194_v31, 0.0  ;;  %v1196_v26 = vsel %vm1983_vm7, %v1193_v39, 0.0 }
 0x2ee   :  { %v1201_v50 = vmul.f32 %v1199_v10, %v1195_v33  ;;  %v1202_v49 = vmul.f32 %v1199_v10, %v1196_v26  ;;  %vm3326_vm8 = vcmp.lt.s32.totalorder %v1940_v23, 127  ;;  %vm3328_vm7 = vcmp.lt.s32.totalorder %v1940_v23, 113 }
 0x2ef   :  { %v1171_v20 = vadd.f32 %v1169_v45, %v1155_v5  ;;  %v1172_v4 = vadd.f32 %v1170_v63, %v1156_v24  ;;  %v1217_v48 = vsel %vm3326_vm8, %v1214_v30, %v2965_v38  ;;  %vm3327_vm11 = vmmov %vm3326_vm8 }
 0x2f0   :  { %v1218_v17 = vsel %vm3327_vm11, %v2965_v38, %v1214_v30  ;;  %vm3329_vm2 = vmmov %vm3328_vm7  ;;  %v1219_v10 = vsel %vm1971_vm6, %v1217_v48, 0.0  ;;  %v1210_v38 = vmul.f32 %v2927_v52, %v2704_v35 }
 0x2f1   :  { %v3031_v62 = vpop.permute.xlu1 %1270  ;;  %v1187_v42 = vadd.f32 %v1185_v55, %v1171_v20  ;;  %v1188_v0 = vadd.f32 %v1186_v3, %v1172_v4  ;;  %v1220_v14 = vsel %vm2014_vm10, %v1218_v17, 0.0  ;;  %v1225_v13 = vmul.f32 %v2939_v51, %v1219_v10 }
 0x2f2   :  { %v1226_v35 = vmul.f32 %v2939_v51, %v1220_v14 }
 0x2f3   :  { %v1203_v8 = vadd.f32 %v1201_v50, %v1187_v42  ;;  %v1204_v40 = vadd.f32 %v1202_v49, %v1188_v0 }
 0x2f5   :  { %v1230_v36 = vpop.permute.xlu1 %1229  ;;  %v1211_v32 = vadd.f32 %v1209_v12, %v1203_v8  ;;  %v1212_v19 = vadd.f32 %v1210_v38, %v1204_v40 }
 0x2f6   :  { %v1233_v60 = vsel %vm3328_vm7, %v1230_v36, %v1232_v21  ;;  %v1234_v37 = vsel %vm3329_vm2, %v1232_v21, %v1230_v36 }
 0x2f7   :  { %v1235_v6 = vsel %vm1957_vm3, %v1233_v60, 0.0  ;;  %v1236_v58 = vsel %vm2136_vm4, %v1234_v37, 0.0  ;;  %v1227_v15 = vadd.f32 %v1225_v13, %v1211_v32  ;;  %v1228_v39 = vadd.f32 %v1226_v35, %v1212_v19 }
 0x2f8   :  { %v1241_v29 = vmul.f32 %v2989_v34, %v1235_v6  ;;  %v1242_v41 = vmul.f32 %v2989_v34, %v1236_v58  ;;  %vm3330_vm3 = vcmp.lt.s32.totalorder %v1947_v18, 240 }
 0x2f9   :  { %v1110_v7 = vpop.permute.xlu1 %1109 }
 0x2fa   :  { %v1113_v27 = vsel %vm184_vm0, %v1110_v7, %v1112_v43  ;;  %v1114_v57 = vsel %vm184_vm0, %v1112_v43, %v1110_v7  ;;  %v1243_v25 = vadd.f32 %v1241_v29, %v1227_v15  ;;  %v1244_v9 = vadd.f32 %v1242_v41, %v1228_v39 }
 0x2fb   :  { %v1115_v52 = vsel %vm1971_vm6, %v1113_v27, 0.0  ;;  %v1116_v16 = vsel %vm2202_vm9, %v1114_v57, 0.0 }
 0x2fc   :  { %v1121_v59 = vmul.f32 %v1119_v54, %v1115_v52  ;;  %v1122_v2 = vmul.f32 %v1119_v54, %v1116_v16 }
 0x2fd   :  { %v1246_v47 = vpop.permute.xlu1 %1245 }
 0x2fe   :  { %v1123_v30 = vadd.f32 %v1121_v59, %v2985_v1  ;;  %v1124_v21 = vadd.f32 %v1122_v2, %v2987_v28  ;;  %v1249_v51 = vsel %vm167_vm15, %v1246_v47, %v1248_v53  ;;  %v1250_v44 = vsel %vm167_vm15, %v1248_v53, %v1246_v47  ;;  %v1264_v28 = vpop.permute.xlu0 %1263 }
 0x2ff   :  { %v1252_v54 = vsel %vm3330_vm3, %v1250_v44, 0.0  ;;  %v1257_v45 = vmul.f32 %v2953_v61, %v1249_v51 }
 0x300   :  { %v1285_v31 = vadd.f32 %v3003_v46, %v1123_v30  ;;  %v1286_v34 = vadd.f32 %v3006_v56, %v1124_v21  ;;  %v1258_v1 = vmul.f32 %v2953_v61, %v1252_v54 }
 0x301   :  { %v1262_v63 = vpop.permute.xlu1 %1261  ;;  %v1259_v56 = vadd.f32 %v1257_v45, %v1243_v25 }
 0x302   :  { %v1265_v5 = vsel %vm184_vm0, %v1262_v63, %v1264_v28  ;;  %v1266_v24 = vsel %vm184_vm0, %v1264_v28, %v1262_v63  ;;  %v1260_v33 = vadd.f32 %v1258_v1, %v1244_v9 }
 0x303   :  { %v1267_v18 = vsel %vm1971_vm6, %v1265_v5, 0.0  ;;  %v1268_v46 = vsel %vm2202_vm9, %v1266_v24, 0.0 }
 0x304   :  { %v1273_v61 = vmul.f32 %v3031_v62, %v1267_v18  ;;  %v1274_v26 = vmul.f32 %v3031_v62, %v1268_v46 }
 0x306   :  { %v1275_v55 = vadd.f32 %v1273_v61, %v1259_v56  ;;  %v1276_v3 = vadd.f32 %v1274_v26, %v1260_v33 }
 0x308   :  { %v1287_v20 = vadd.f32 %v1285_v31, %v1275_v55  ;;  %v1288_v4 = vadd.f32 %v1286_v34, %v1276_v3 }
 0x30a   :  { %v1289_v43 = vmax.f32 %v1287_v20, 0.0  ;;  %v1290_v50 = vmax.f32 %v1288_v4, 0.0 }
 0x30c   :  { %1291 = vst [vmem:[%s3101_s2] sm:$0xff] %v1289_v43  ;;  %1292 = vst [vmem:[%s3101_s2 + $0x8] sm:$0xff] %v1290_v50 }

</bundles_post_ra>
